<compile_context>
chip_gen: v7x
topology: tpu7x:2x2x1
jax: 0.10.0
libtpu: 0.0.40
codegen_flags: <defaults>
</compile_context>

<pallas_src>
import functools
import math

import jax
import jax.numpy as jnp
from jax import lax
from jax.experimental import pallas as pl
from jax.experimental.pallas import tpu as pltpu


def _gelu_erf(v):
    # Exact-erf GELU via Abramowitz-Stegun 7.1.26 erf approximation
    # (max abs err ~1.5e-7); uses only exp, which lowers to the EUP slot.
    z = v * (1.0 / math.sqrt(2.0))
    az = jnp.abs(z)
    t = 1.0 / (1.0 + 0.3275911 * az)
    poly = t * (0.254829592 + t * (-0.284496736 + t * (1.421413741
             + t * (-1.453152027 + t * 1.061405429))))
    erf_abs = 1.0 - poly * jnp.exp(-az * az)
    erf_z = jnp.where(z >= 0.0, erf_abs, -erf_abs)
    return v * 0.5 * (1.0 + erf_z)


def _layer_kernel(x_ref, y_ref,
                  ln0_a_ref, ln0_b_ref,
                  wk_ref, bk_ref, wv_ref, bv_ref, wo_ref, bo_ref,
                  wg_ref, bg_ref,
                  ln1_a_ref, ln1_b_ref,
                  w1_ref, b1_ref, w2_ref, b2_ref,
                  o_ref, *, h, d_k, eps):
    f32 = jnp.float32
    x = x_ref[0].astype(f32)          # (S, D)
    y = y_ref[0].astype(f32)          # (S, D)
    S, D = x.shape

    def layernorm(v, a, b):
        # torch: a * (v - mean) / (std_unbiased + eps) + b
        mean = jnp.mean(v, axis=-1, keepdims=True)
        cent = v - mean
        var = jnp.sum(cent * cent, axis=-1, keepdims=True) * (1.0 / (D - 1))
        std = jnp.sqrt(var)
        return a * cent / (std + eps) + b

    # ---- sublayer[0]: self-gated residual around light-query co-attention ----
    n1 = layernorm(x, ln0_a_ref[...].astype(f32), ln0_b_ref[...].astype(f32))

    # key / value projections: one lane-dense (S,D)@(D,D) MXU call each.
    kproj = jnp.dot(y, wk_ref[...].astype(f32),
                    preferred_element_type=f32) + bk_ref[...].astype(f32)
    vproj = jnp.dot(y, wv_ref[...].astype(f32),
                    preferred_element_type=f32) + bv_ref[...].astype(f32)

    wo = wo_ref[...].astype(f32)      # (D, D) = Wo^T
    scale = 1.0 / math.sqrt(d_k)

    # Heads looped in-register (unrolled); each head's (S,d_k) output is folded
    # straight into the output projection, so there is no concat and the only
    # wide intermediate is the (S, D) accumulator.
    attn_acc = jnp.zeros((S, D), f32)
    for hi in range(h):
        lo = hi * d_k
        q_h = n1[:, lo:lo + d_k]                 # query is not projected
        k_h = kproj[:, lo:lo + d_k]
        v_h = vproj[:, lo:lo + d_k]
        # q @ k^T without an explicit transpose (contract over d_k).
        scores = lax.dot_general(q_h, k_h, (((1,), (1,)), ((), ())),
                                 preferred_element_type=f32) * scale      # (S, S)
        scores = scores - jnp.max(scores, axis=-1, keepdims=True)
        p = jnp.exp(scores)
        p = p * pl.reciprocal(jnp.sum(p, axis=-1, keepdims=True), approx=False)
        out_h = jnp.dot(p.astype(v_h.dtype), v_h,
                        preferred_element_type=f32)                       # (S, d_k)
        # concat(out_h over heads) @ Wo^T  ==  sum_h out_h @ Wo^T[head rows]
        attn_acc = attn_acc + jnp.dot(out_h, wo[lo:lo + d_k, :],
                                      preferred_element_type=f32)
    attn = attn_acc + bo_ref[...].astype(f32)

    x1 = x + attn                                             # residual (eval dropout)
    gate_logits = jnp.dot(x1, wg_ref[...].astype(f32),
                          preferred_element_type=f32) + bg_ref[...].astype(f32)
    gate = 1.0 / (1.0 + jnp.exp(-gate_logits))                # sigmoid
    x2 = gate * x1

    # ---- sublayer[1]: residual around the position-wise feed-forward ----
    n2 = layernorm(x2, ln1_a_ref[...].astype(f32), ln1_b_ref[...].astype(f32))
    h1 = jnp.dot(n2, w1_ref[...].astype(f32),
                 preferred_element_type=f32) + b1_ref[...].astype(f32)    # (S, d_ff)
    g = _gelu_erf(h1)
    ff = jnp.dot(g, w2_ref[...].astype(f32),
                 preferred_element_type=f32) + b2_ref[...].astype(f32)    # (S, D)

    o_ref[0] = (x2 + ff).astype(o_ref.dtype)


def light_query_co_transformer_layer(x, y, params, *, num_heads, eps=1e-6):
    """x, y: (B, S, d_model); params: torch-convention Linear/LayerNorm parameters."""
    B, S, D = x.shape
    assert D % num_heads == 0
    d_k = D // num_heads
    d_ff = params["w1"].shape[0]

    row = lambda v: v.reshape(1, -1)
    # torch Linear weight is (out, in); pre-transpose so the kernel does row-major matmuls.
    wk_t, wv_t = params["wk"].T, params["wv"].T
    wo_t, wg_t = params["wo"].T, params["wg"].T
    w1_t, w2_t = params["w1"].T, params["w2"].T

    kernel = functools.partial(_layer_kernel, h=num_heads, d_k=d_k, eps=eps)

    flops = B * (4 * 2 * S * D * D          # k/v/out/gate projections
                 + 2 * 2 * S * S * D        # q k^T and p v over all heads
                 + 2 * 2 * S * D * d_ff)    # FFN
    transcendentals = B * (num_heads * S * S + S * D + S * d_ff)
    bytes_accessed = 4 * (3 * B * S * D + 4 * D * D + 2 * D * d_ff + 10 * D + d_ff)
    cost = pl.CostEstimate(flops=int(flops), transcendentals=int(transcendentals),
                           bytes_accessed=int(bytes_accessed))

    # Rough per-step VMEM working set; only raise the scoped limit when required
    # (defaults 16/32 MiB; clamp to v7x's 64 MiB physical).
    vmem_bytes = 4 * (2 * 3 * S * D + 2 * (4 * D * D + 2 * D * d_ff)
                      + 12 * S * D + 4 * S * d_ff + 4 * S * S)
    compiler_kwargs = dict(dimension_semantics=("parallel",))
    if vmem_bytes > 32 * 1024 * 1024:
        compiler_kwargs["vmem_limit_bytes"] = min(int(1.5 * vmem_bytes), 64 * 1024 * 1024)

    const2d = lambda shape: pl.BlockSpec(shape, lambda b: (0, 0))

    out = pl.pallas_call(
        kernel,
        out_shape=jax.ShapeDtypeStruct((B, S, D), x.dtype),
        grid_spec=pltpu.PrefetchScalarGridSpec(
            num_scalar_prefetch=0,
            grid=(B,),
            in_specs=[
                pl.BlockSpec((1, S, D), lambda b: (b, 0, 0)),   # x
                pl.BlockSpec((1, S, D), lambda b: (b, 0, 0)),   # y
                const2d((1, D)),                                # ln0_a
                const2d((1, D)),                                # ln0_b
                const2d((D, D)),                                # Wk^T
                const2d((1, D)),                                # bk
                const2d((D, D)),                                # Wv^T
                const2d((1, D)),                                # bv
                const2d((D, D)),                                # Wo^T
                const2d((1, D)),                                # bo
                const2d((D, D)),                                # Wgate^T
                const2d((1, D)),                                # bgate
                const2d((1, D)),                                # ln1_a
                const2d((1, D)),                                # ln1_b
                const2d((D, d_ff)),                             # W1^T
                const2d((1, d_ff)),                             # b1
                const2d((d_ff, D)),                             # W2^T
                const2d((1, D)),                                # b2
            ],
            out_specs=pl.BlockSpec((1, S, D), lambda b: (b, 0, 0)),
        ),
        compiler_params=pltpu.CompilerParams(**compiler_kwargs),
        cost_estimate=cost,
    )(x, y,
      row(params["ln0_a"]), row(params["ln0_b"]),
      wk_t, row(params["bk"]), wv_t, row(params["bv"]),
      wo_t, row(params["bo"]), wg_t, row(params["bg"]),
      row(params["ln1_a"]), row(params["ln1_b"]),
      w1_t, row(params["b1"]), w2_t, row(params["b2"]))
    return out


def _reference(x, y, params, *, num_heads, eps=1e-6):
    """Pure-JAX mirror of the PyTorch forward (eval mode, mask=None)."""
    B, S, D = x.shape
    d_k = D // num_heads

    def layernorm(v, a, b):
        mean = v.mean(-1, keepdims=True)
        var = jnp.sum((v - mean) ** 2, axis=-1, keepdims=True) / (D - 1)
        std = jnp.sqrt(var)
        return a * (v - mean) / (std + eps) + b

    def linear(v, w, b):
        return v @ w.T + b

    n1 = layernorm(x, params["ln0_a"], params["ln0_b"])
    q = n1.reshape(B, S, num_heads, d_k).transpose(0, 2, 1, 3)
    k = linear(y, params["wk"], params["bk"]).reshape(B, S, num_heads, d_k).transpose(0, 2, 1, 3)
    v = linear(y, params["wv"], params["bv"]).reshape(B, S, num_heads, d_k).transpose(0, 2, 1, 3)
    scores = jnp.einsum("bhqd,bhkd->bhqk", q, k) / math.sqrt(d_k)
    p = jax.nn.softmax(scores, axis=-1)
    attn = jnp.einsum("bhqk,bhkd->bhqd", p, v).transpose(0, 2, 1, 3).reshape(B, S, D)
    attn = linear(attn, params["wo"], params["bo"])
    x1 = x + attn
    gate = jax.nn.sigmoid(linear(x1, params["wg"], params["bg"]))
    x2 = gate * x1
    n2 = layernorm(x2, params["ln1_a"], params["ln1_b"])
    h1 = linear(n2, params["w1"], params["b1"])
    g = h1 * 0.5 * (1.0 + lax.erf(h1 / math.sqrt(2.0)))
    ff = linear(g, params["w2"], params["b2"])
    return x2 + ff


if __name__ == "__main__":
    B, S, d_model, num_heads, d_ff = 2, 8, 32, 4, 64

    key0 = jax.random.PRNGKey(0)
    keys = jax.random.split(key0, 24)
    x = jax.random.normal(keys[0], (B, S, d_model), dtype=jnp.float32)
    y = jax.random.normal(keys[1], (B, S, d_model), dtype=jnp.float32)

    def linear_params(kw, kb, out_dim, in_dim):
        bound = 1.0 / math.sqrt(in_dim)
        w = jax.random.uniform(kw, (out_dim, in_dim), minval=-bound, maxval=bound,
                               dtype=jnp.float32)
        b = jax.random.uniform(kb, (out_dim,), minval=-bound, maxval=bound,
                               dtype=jnp.float32)
        return w, b

    params = {}
    params["wk"], params["bk"] = linear_params(keys[2], keys[3], d_model, d_model)
    params["wv"], params["bv"] = linear_params(keys[4], keys[5], d_model, d_model)
    params["wo"], params["bo"] = linear_params(keys[6], keys[7], d_model, d_model)
    params["wg"], params["bg"] = linear_params(keys[8], keys[9], d_model, d_model)
    params["w1"], params["b1"] = linear_params(keys[10], keys[11], d_ff, d_model)
    params["w2"], params["b2"] = linear_params(keys[12], keys[13], d_model, d_ff)
    params["ln0_a"] = 1.0 + 0.1 * jax.random.normal(keys[14], (d_model,), jnp.float32)
    params["ln0_b"] = 0.1 * jax.random.normal(keys[15], (d_model,), jnp.float32)
    params["ln1_a"] = 1.0 + 0.1 * jax.random.normal(keys[16], (d_model,), jnp.float32)
    params["ln1_b"] = 0.1 * jax.random.normal(keys[17], (d_model,), jnp.float32)

    out = light_query_co_transformer_layer(x, y, params, num_heads=num_heads)
    out = jax.block_until_ready(out)

    ref = _reference(x, y, params, num_heads=num_heads)
    assert out.shape == (B, S, d_model)
    assert jnp.allclose(out, ref, atol=5e-5, rtol=5e-5), float(jnp.max(jnp.abs(out - ref)))
    print("KERNEL_OK")
</pallas_src>

<mosaic_0001>
module attributes {stable_mosaic.version = 11 : i64} {
  func.func @_layer_kernel(%arg0: i32, %arg1: memref<1x8x32xf32, #tpu.memory_space<vmem>>, %arg2: memref<1x8x32xf32, #tpu.memory_space<vmem>>, %arg3: memref<1x32xf32, #tpu.memory_space<vmem>>, %arg4: memref<1x32xf32, #tpu.memory_space<vmem>>, %arg5: memref<32x32xf32, #tpu.memory_space<vmem>>, %arg6: memref<1x32xf32, #tpu.memory_space<vmem>>, %arg7: memref<32x32xf32, #tpu.memory_space<vmem>>, %arg8: memref<1x32xf32, #tpu.memory_space<vmem>>, %arg9: memref<32x32xf32, #tpu.memory_space<vmem>>, %arg10: memref<1x32xf32, #tpu.memory_space<vmem>>, %arg11: memref<32x32xf32, #tpu.memory_space<vmem>>, %arg12: memref<1x32xf32, #tpu.memory_space<vmem>>, %arg13: memref<1x32xf32, #tpu.memory_space<vmem>>, %arg14: memref<1x32xf32, #tpu.memory_space<vmem>>, %arg15: memref<32x64xf32, #tpu.memory_space<vmem>>, %arg16: memref<1x64xf32, #tpu.memory_space<vmem>>, %arg17: memref<64x32xf32, #tpu.memory_space<vmem>>, %arg18: memref<1x32xf32, #tpu.memory_space<vmem>>, %arg19: memref<1x8x32xf32, #tpu.memory_space<vmem>>) attributes {dimension_semantics = [#tpu.dimension_semantics<parallel>], iteration_bounds = array<i64: 2>, scalar_prefetch = 0 : i64, scratch_operands = 0 : i64, tpu.core_type = #tpu.core_type<tc>, window_params = [{transform_indices = @transform_0, window_bounds = array<i64: 1, 8, 32>}, {transform_indices = @transform_1, window_bounds = array<i64: 1, 8, 32>}, {pipeline_mode = #tpu.pipeline_mode<synchronous>, transform_indices = @transform_2, window_bounds = array<i64: 1, 32>}, {pipeline_mode = #tpu.pipeline_mode<synchronous>, transform_indices = @transform_3, window_bounds = array<i64: 1, 32>}, {pipeline_mode = #tpu.pipeline_mode<synchronous>, transform_indices = @transform_4, window_bounds = array<i64: 32, 32>}, {pipeline_mode = #tpu.pipeline_mode<synchronous>, transform_indices = @transform_5, window_bounds = array<i64: 1, 32>}, {pipeline_mode = #tpu.pipeline_mode<synchronous>, transform_indices = @transform_6, window_bounds = array<i64: 32, 32>}, {pipeline_mode = #tpu.pipeline_mode<synchronous>, transform_indices = @transform_7, window_bounds = array<i64: 1, 32>}, {pipeline_mode = #tpu.pipeline_mode<synchronous>, transform_indices = @transform_8, window_bounds = array<i64: 32, 32>}, {pipeline_mode = #tpu.pipeline_mode<synchronous>, transform_indices = @transform_9, window_bounds = array<i64: 1, 32>}, {pipeline_mode = #tpu.pipeline_mode<synchronous>, transform_indices = @transform_10, window_bounds = array<i64: 32, 32>}, {pipeline_mode = #tpu.pipeline_mode<synchronous>, transform_indices = @transform_11, window_bounds = array<i64: 1, 32>}, {pipeline_mode = #tpu.pipeline_mode<synchronous>, transform_indices = @transform_12, window_bounds = array<i64: 1, 32>}, {pipeline_mode = #tpu.pipeline_mode<synchronous>, transform_indices = @transform_13, window_bounds = array<i64: 1, 32>}, {pipeline_mode = #tpu.pipeline_mode<synchronous>, transform_indices = @transform_14, window_bounds = array<i64: 32, 64>}, {pipeline_mode = #tpu.pipeline_mode<synchronous>, transform_indices = @transform_15, window_bounds = array<i64: 1, 64>}, {pipeline_mode = #tpu.pipeline_mode<synchronous>, transform_indices = @transform_16, window_bounds = array<i64: 64, 32>}, {pipeline_mode = #tpu.pipeline_mode<synchronous>, transform_indices = @transform_17, window_bounds = array<i64: 1, 32>}, {transform_indices = @transform_18, window_bounds = array<i64: 1, 8, 32>}]} {
    %c0 = arith.constant 0 : index
    %c0_0 = arith.constant 0 : index
    %c0_1 = arith.constant 0 : index
    %0 = vector.load %arg1[%c0, %c0_0, %c0_1] : memref<1x8x32xf32, #tpu.memory_space<vmem>>, vector<1x8x32xf32>
    %1 = vector.shape_cast %0 : vector<1x8x32xf32> to vector<8x32xf32>
    %c0_2 = arith.constant 0 : index
    %c0_3 = arith.constant 0 : index
    %c0_4 = arith.constant 0 : index
    %2 = vector.load %arg2[%c0_2, %c0_3, %c0_4] : memref<1x8x32xf32, #tpu.memory_space<vmem>>, vector<1x8x32xf32>
    %3 = vector.shape_cast %2 : vector<1x8x32xf32> to vector<8x32xf32>
    %c0_5 = arith.constant 0 : index
    %c0_6 = arith.constant 0 : index
    %4 = vector.load %arg3[%c0_5, %c0_6] : memref<1x32xf32, #tpu.memory_space<vmem>>, vector<1x32xf32>
    %c0_7 = arith.constant 0 : index
    %c0_8 = arith.constant 0 : index
    %5 = vector.load %arg4[%c0_7, %c0_8] : memref<1x32xf32, #tpu.memory_space<vmem>>, vector<1x32xf32>
    %cst = arith.constant dense<0.000000e+00> : vector<8xf32>
    %6 = vector.multi_reduction <add>, %1, %cst [1] : vector<8x32xf32> to vector<8xf32>
    %7 = vector.shape_cast %6 : vector<8xf32> to vector<8x1xf32>
    %cst_9 = arith.constant 3.200000e+01 : f32
    %8 = vector.broadcast %cst_9 : f32 to vector<8x1xf32>
    %9 = arith.divf %7, %8 : vector<8x1xf32>
    %10 = vector.broadcast %9 : vector<8x1xf32> to vector<8x32xf32>
    %11 = arith.subf %1, %10 : vector<8x32xf32>
    %12 = arith.mulf %11, %11 : vector<8x32xf32>
    %cst_10 = arith.constant dense<0.000000e+00> : vector<8xf32>
    %13 = vector.multi_reduction <add>, %12, %cst_10 [1] : vector<8x32xf32> to vector<8xf32>
    %14 = vector.shape_cast %13 : vector<8xf32> to vector<8x1xf32>
    %cst_11 = arith.constant 0.0322580636 : f32
    %15 = vector.broadcast %cst_11 : f32 to vector<8x1xf32>
    %16 = arith.mulf %14, %15 : vector<8x1xf32>
    %17 = math.sqrt %16 : vector<8x1xf32>
    %18 = vector.broadcast %4 : vector<1x32xf32> to vector<8x32xf32>
    %19 = arith.mulf %18, %11 : vector<8x32xf32>
    %cst_12 = arith.constant 9.99999997E-7 : f32
    %20 = vector.broadcast %cst_12 : f32 to vector<8x1xf32>
    %21 = arith.addf %17, %20 : vector<8x1xf32>
    %22 = vector.broadcast %21 : vector<8x1xf32> to vector<8x32xf32>
    %23 = arith.divf %19, %22 : vector<8x32xf32>
    %24 = vector.broadcast %5 : vector<1x32xf32> to vector<8x32xf32>
    %25 = arith.addf %23, %24 : vector<8x32xf32>
    %c0_13 = arith.constant 0 : index
    %c0_14 = arith.constant 0 : index
    %26 = vector.load %arg5[%c0_13, %c0_14] : memref<32x32xf32, #tpu.memory_space<vmem>>, vector<32x32xf32>
    %cst_15 = arith.constant dense<0.000000e+00> : vector<8x32xf32>
    %27 = tpu.matmul %3, %26, %cst_15 {dimension_numbers = #tpu.dot_dimension_numbers<[1], [0], [0], [1], [0, 0, 1, 1], [], []>} : vector<8x32xf32>, vector<32x32xf32>, vector<8x32xf32> -> vector<8x32xf32>
    %c0_16 = arith.constant 0 : index
    %c0_17 = arith.constant 0 : index
    %28 = vector.load %arg6[%c0_16, %c0_17] : memref<1x32xf32, #tpu.memory_space<vmem>>, vector<1x32xf32>
    %29 = vector.broadcast %28 : vector<1x32xf32> to vector<8x32xf32>
    %30 = arith.addf %27, %29 : vector<8x32xf32>
    %c0_18 = arith.constant 0 : index
    %c0_19 = arith.constant 0 : index
    %31 = vector.load %arg7[%c0_18, %c0_19] : memref<32x32xf32, #tpu.memory_space<vmem>>, vector<32x32xf32>
    %cst_20 = arith.constant dense<0.000000e+00> : vector<8x32xf32>
    %32 = tpu.matmul %3, %31, %cst_20 {dimension_numbers = #tpu.dot_dimension_numbers<[1], [0], [0], [1], [0, 0, 1, 1], [], []>} : vector<8x32xf32>, vector<32x32xf32>, vector<8x32xf32> -> vector<8x32xf32>
    %c0_21 = arith.constant 0 : index
    %c0_22 = arith.constant 0 : index
    %33 = vector.load %arg8[%c0_21, %c0_22] : memref<1x32xf32, #tpu.memory_space<vmem>>, vector<1x32xf32>
    %34 = vector.broadcast %33 : vector<1x32xf32> to vector<8x32xf32>
    %35 = arith.addf %32, %34 : vector<8x32xf32>
    %c0_23 = arith.constant 0 : index
    %c0_24 = arith.constant 0 : index
    %36 = vector.load %arg9[%c0_23, %c0_24] : memref<32x32xf32, #tpu.memory_space<vmem>>, vector<32x32xf32>
    %cst_25 = arith.constant 0.000000e+00 : f32
    %37 = vector.broadcast %cst_25 : f32 to vector<8x32xf32>
    %38 = vector.extract_strided_slice %25 {offsets = [0, 0], sizes = [8, 8], strides = [1, 1]} : vector<8x32xf32> to vector<8x8xf32>
    %39 = vector.extract_strided_slice %30 {offsets = [0, 0], sizes = [8, 8], strides = [1, 1]} : vector<8x32xf32> to vector<8x8xf32>
    %40 = vector.extract_strided_slice %35 {offsets = [0, 0], sizes = [8, 8], strides = [1, 1]} : vector<8x32xf32> to vector<8x8xf32>
    %cst_26 = arith.constant dense<0.000000e+00> : vector<8x8xf32>
    %41 = tpu.matmul %38, %39, %cst_26 {dimension_numbers = #tpu.dot_dimension_numbers<[1], [1], [0], [0], [0, 0, 1, 0], [], []>} : vector<8x8xf32>, vector<8x8xf32>, vector<8x8xf32> -> vector<8x8xf32>
    %cst_27 = arith.constant 0.353553385 : f32
    %42 = vector.broadcast %cst_27 : f32 to vector<8x8xf32>
    %43 = arith.mulf %41, %42 : vector<8x8xf32>
    %cst_28 = arith.constant dense<0xFF800000> : vector<8xf32>
    %44 = vector.multi_reduction <maximumf>, %43, %cst_28 [1] : vector<8x8xf32> to vector<8xf32>
    %45 = vector.shape_cast %44 : vector<8xf32> to vector<8x1xf32>
    %46 = vector.broadcast %45 : vector<8x1xf32> to vector<8x8xf32>
    %47 = arith.subf %43, %46 : vector<8x8xf32>
    %48 = math.exp %47 : vector<8x8xf32>
    %cst_29 = arith.constant dense<0.000000e+00> : vector<8xf32>
    %49 = vector.multi_reduction <add>, %48, %cst_29 [1] : vector<8x8xf32> to vector<8xf32>
    %50 = vector.shape_cast %49 : vector<8xf32> to vector<8x1xf32>
    %51 = tpu.reciprocal %50 : vector<8x1xf32> -> vector<8x1xf32>
    %52 = vector.broadcast %51 : vector<8x1xf32> to vector<8x8xf32>
    %53 = arith.mulf %48, %52 : vector<8x8xf32>
    %cst_30 = arith.constant dense<0.000000e+00> : vector<8x8xf32>
    %54 = tpu.matmul %53, %40, %cst_30 {dimension_numbers = #tpu.dot_dimension_numbers<[1], [0], [0], [1], [0, 0, 1, 1], [], []>} : vector<8x8xf32>, vector<8x8xf32>, vector<8x8xf32> -> vector<8x8xf32>
    %55 = vector.extract_strided_slice %36 {offsets = [0, 0], sizes = [8, 32], strides = [1, 1]} : vector<32x32xf32> to vector<8x32xf32>
    %cst_31 = arith.constant dense<0.000000e+00> : vector<8x32xf32>
    %56 = tpu.matmul %54, %55, %cst_31 {dimension_numbers = #tpu.dot_dimension_numbers<[1], [0], [0], [1], [0, 0, 1, 1], [], []>} : vector<8x8xf32>, vector<8x32xf32>, vector<8x32xf32> -> vector<8x32xf32>
    %57 = arith.addf %37, %56 : vector<8x32xf32>
    %58 = vector.extract_strided_slice %25 {offsets = [0, 8], sizes = [8, 8], strides = [1, 1]} : vector<8x32xf32> to vector<8x8xf32>
    %59 = vector.extract_strided_slice %30 {offsets = [0, 8], sizes = [8, 8], strides = [1, 1]} : vector<8x32xf32> to vector<8x8xf32>
    %60 = vector.extract_strided_slice %35 {offsets = [0, 8], sizes = [8, 8], strides = [1, 1]} : vector<8x32xf32> to vector<8x8xf32>
    %cst_32 = arith.constant dense<0.000000e+00> : vector<8x8xf32>
    %61 = tpu.matmul %58, %59, %cst_32 {dimension_numbers = #tpu.dot_dimension_numbers<[1], [1], [0], [0], [0, 0, 1, 0], [], []>} : vector<8x8xf32>, vector<8x8xf32>, vector<8x8xf32> -> vector<8x8xf32>
    %cst_33 = arith.constant 0.353553385 : f32
    %62 = vector.broadcast %cst_33 : f32 to vector<8x8xf32>
    %63 = arith.mulf %61, %62 : vector<8x8xf32>
    %cst_34 = arith.constant dense<0xFF800000> : vector<8xf32>
    %64 = vector.multi_reduction <maximumf>, %63, %cst_34 [1] : vector<8x8xf32> to vector<8xf32>
    %65 = vector.shape_cast %64 : vector<8xf32> to vector<8x1xf32>
    %66 = vector.broadcast %65 : vector<8x1xf32> to vector<8x8xf32>
    %67 = arith.subf %63, %66 : vector<8x8xf32>
    %68 = math.exp %67 : vector<8x8xf32>
    %cst_35 = arith.constant dense<0.000000e+00> : vector<8xf32>
    %69 = vector.multi_reduction <add>, %68, %cst_35 [1] : vector<8x8xf32> to vector<8xf32>
    %70 = vector.shape_cast %69 : vector<8xf32> to vector<8x1xf32>
    %71 = tpu.reciprocal %70 : vector<8x1xf32> -> vector<8x1xf32>
    %72 = vector.broadcast %71 : vector<8x1xf32> to vector<8x8xf32>
    %73 = arith.mulf %68, %72 : vector<8x8xf32>
    %cst_36 = arith.constant dense<0.000000e+00> : vector<8x8xf32>
    %74 = tpu.matmul %73, %60, %cst_36 {dimension_numbers = #tpu.dot_dimension_numbers<[1], [0], [0], [1], [0, 0, 1, 1], [], []>} : vector<8x8xf32>, vector<8x8xf32>, vector<8x8xf32> -> vector<8x8xf32>
    %75 = vector.extract_strided_slice %36 {offsets = [8, 0], sizes = [8, 32], strides = [1, 1]} : vector<32x32xf32> to vector<8x32xf32>
    %cst_37 = arith.constant dense<0.000000e+00> : vector<8x32xf32>
    %76 = tpu.matmul %74, %75, %cst_37 {dimension_numbers = #tpu.dot_dimension_numbers<[1], [0], [0], [1], [0, 0, 1, 1], [], []>} : vector<8x8xf32>, vector<8x32xf32>, vector<8x32xf32> -> vector<8x32xf32>
    %77 = arith.addf %57, %76 : vector<8x32xf32>
    %78 = vector.extract_strided_slice %25 {offsets = [0, 16], sizes = [8, 8], strides = [1, 1]} : vector<8x32xf32> to vector<8x8xf32>
    %79 = vector.extract_strided_slice %30 {offsets = [0, 16], sizes = [8, 8], strides = [1, 1]} : vector<8x32xf32> to vector<8x8xf32>
    %80 = vector.extract_strided_slice %35 {offsets = [0, 16], sizes = [8, 8], strides = [1, 1]} : vector<8x32xf32> to vector<8x8xf32>
    %cst_38 = arith.constant dense<0.000000e+00> : vector<8x8xf32>
    %81 = tpu.matmul %78, %79, %cst_38 {dimension_numbers = #tpu.dot_dimension_numbers<[1], [1], [0], [0], [0, 0, 1, 0], [], []>} : vector<8x8xf32>, vector<8x8xf32>, vector<8x8xf32> -> vector<8x8xf32>
    %cst_39 = arith.constant 0.353553385 : f32
    %82 = vector.broadcast %cst_39 : f32 to vector<8x8xf32>
    %83 = arith.mulf %81, %82 : vector<8x8xf32>
    %cst_40 = arith.constant dense<0xFF800000> : vector<8xf32>
    %84 = vector.multi_reduction <maximumf>, %83, %cst_40 [1] : vector<8x8xf32> to vector<8xf32>
    %85 = vector.shape_cast %84 : vector<8xf32> to vector<8x1xf32>
    %86 = vector.broadcast %85 : vector<8x1xf32> to vector<8x8xf32>
    %87 = arith.subf %83, %86 : vector<8x8xf32>
    %88 = math.exp %87 : vector<8x8xf32>
    %cst_41 = arith.constant dense<0.000000e+00> : vector<8xf32>
    %89 = vector.multi_reduction <add>, %88, %cst_41 [1] : vector<8x8xf32> to vector<8xf32>
    %90 = vector.shape_cast %89 : vector<8xf32> to vector<8x1xf32>
    %91 = tpu.reciprocal %90 : vector<8x1xf32> -> vector<8x1xf32>
    %92 = vector.broadcast %91 : vector<8x1xf32> to vector<8x8xf32>
    %93 = arith.mulf %88, %92 : vector<8x8xf32>
    %cst_42 = arith.constant dense<0.000000e+00> : vector<8x8xf32>
    %94 = tpu.matmul %93, %80, %cst_42 {dimension_numbers = #tpu.dot_dimension_numbers<[1], [0], [0], [1], [0, 0, 1, 1], [], []>} : vector<8x8xf32>, vector<8x8xf32>, vector<8x8xf32> -> vector<8x8xf32>
    %95 = vector.extract_strided_slice %36 {offsets = [16, 0], sizes = [8, 32], strides = [1, 1]} : vector<32x32xf32> to vector<8x32xf32>
    %cst_43 = arith.constant dense<0.000000e+00> : vector<8x32xf32>
    %96 = tpu.matmul %94, %95, %cst_43 {dimension_numbers = #tpu.dot_dimension_numbers<[1], [0], [0], [1], [0, 0, 1, 1], [], []>} : vector<8x8xf32>, vector<8x32xf32>, vector<8x32xf32> -> vector<8x32xf32>
    %97 = arith.addf %77, %96 : vector<8x32xf32>
    %98 = vector.extract_strided_slice %25 {offsets = [0, 24], sizes = [8, 8], strides = [1, 1]} : vector<8x32xf32> to vector<8x8xf32>
    %99 = vector.extract_strided_slice %30 {offsets = [0, 24], sizes = [8, 8], strides = [1, 1]} : vector<8x32xf32> to vector<8x8xf32>
    %100 = vector.extract_strided_slice %35 {offsets = [0, 24], sizes = [8, 8], strides = [1, 1]} : vector<8x32xf32> to vector<8x8xf32>
    %cst_44 = arith.constant dense<0.000000e+00> : vector<8x8xf32>
    %101 = tpu.matmul %98, %99, %cst_44 {dimension_numbers = #tpu.dot_dimension_numbers<[1], [1], [0], [0], [0, 0, 1, 0], [], []>} : vector<8x8xf32>, vector<8x8xf32>, vector<8x8xf32> -> vector<8x8xf32>
    %cst_45 = arith.constant 0.353553385 : f32
    %102 = vector.broadcast %cst_45 : f32 to vector<8x8xf32>
    %103 = arith.mulf %101, %102 : vector<8x8xf32>
    %cst_46 = arith.constant dense<0xFF800000> : vector<8xf32>
    %104 = vector.multi_reduction <maximumf>, %103, %cst_46 [1] : vector<8x8xf32> to vector<8xf32>
    %105 = vector.shape_cast %104 : vector<8xf32> to vector<8x1xf32>
    %106 = vector.broadcast %105 : vector<8x1xf32> to vector<8x8xf32>
    %107 = arith.subf %103, %106 : vector<8x8xf32>
    %108 = math.exp %107 : vector<8x8xf32>
    %cst_47 = arith.constant dense<0.000000e+00> : vector<8xf32>
    %109 = vector.multi_reduction <add>, %108, %cst_47 [1] : vector<8x8xf32> to vector<8xf32>
    %110 = vector.shape_cast %109 : vector<8xf32> to vector<8x1xf32>
    %111 = tpu.reciprocal %110 : vector<8x1xf32> -> vector<8x1xf32>
    %112 = vector.broadcast %111 : vector<8x1xf32> to vector<8x8xf32>
    %113 = arith.mulf %108, %112 : vector<8x8xf32>
    %cst_48 = arith.constant dense<0.000000e+00> : vector<8x8xf32>
    %114 = tpu.matmul %113, %100, %cst_48 {dimension_numbers = #tpu.dot_dimension_numbers<[1], [0], [0], [1], [0, 0, 1, 1], [], []>} : vector<8x8xf32>, vector<8x8xf32>, vector<8x8xf32> -> vector<8x8xf32>
    %115 = vector.extract_strided_slice %36 {offsets = [24, 0], sizes = [8, 32], strides = [1, 1]} : vector<32x32xf32> to vector<8x32xf32>
    %cst_49 = arith.constant dense<0.000000e+00> : vector<8x32xf32>
    %116 = tpu.matmul %114, %115, %cst_49 {dimension_numbers = #tpu.dot_dimension_numbers<[1], [0], [0], [1], [0, 0, 1, 1], [], []>} : vector<8x8xf32>, vector<8x32xf32>, vector<8x32xf32> -> vector<8x32xf32>
    %117 = arith.addf %97, %116 : vector<8x32xf32>
    %c0_50 = arith.constant 0 : index
    %c0_51 = arith.constant 0 : index
    %118 = vector.load %arg10[%c0_50, %c0_51] : memref<1x32xf32, #tpu.memory_space<vmem>>, vector<1x32xf32>
    %119 = vector.broadcast %118 : vector<1x32xf32> to vector<8x32xf32>
    %120 = arith.addf %117, %119 : vector<8x32xf32>
    %121 = arith.addf %1, %120 : vector<8x32xf32>
    %c0_52 = arith.constant 0 : index
    %c0_53 = arith.constant 0 : index
    %122 = vector.load %arg11[%c0_52, %c0_53] : memref<32x32xf32, #tpu.memory_space<vmem>>, vector<32x32xf32>
    %cst_54 = arith.constant dense<0.000000e+00> : vector<8x32xf32>
    %123 = tpu.matmul %121, %122, %cst_54 {dimension_numbers = #tpu.dot_dimension_numbers<[1], [0], [0], [1], [0, 0, 1, 1], [], []>} : vector<8x32xf32>, vector<32x32xf32>, vector<8x32xf32> -> vector<8x32xf32>
    %c0_55 = arith.constant 0 : index
    %c0_56 = arith.constant 0 : index
    %124 = vector.load %arg12[%c0_55, %c0_56] : memref<1x32xf32, #tpu.memory_space<vmem>>, vector<1x32xf32>
    %125 = vector.broadcast %124 : vector<1x32xf32> to vector<8x32xf32>
    %126 = arith.addf %123, %125 : vector<8x32xf32>
    %cst_57 = arith.constant 0.000000e+00 : f32
    %127 = vector.broadcast %cst_57 : f32 to vector<8x32xf32>
    %128 = arith.subf %127, %126 : vector<8x32xf32>
    %129 = math.exp %128 : vector<8x32xf32>
    %cst_58 = arith.constant 1.000000e+00 : f32
    %130 = vector.broadcast %cst_58 : f32 to vector<8x32xf32>
    %131 = arith.addf %130, %129 : vector<8x32xf32>
    %cst_59 = arith.constant 1.000000e+00 : f32
    %132 = vector.broadcast %cst_59 : f32 to vector<8x32xf32>
    %133 = arith.divf %132, %131 : vector<8x32xf32>
    %134 = arith.mulf %133, %121 : vector<8x32xf32>
    %c0_60 = arith.constant 0 : index
    %c0_61 = arith.constant 0 : index
    %135 = vector.load %arg13[%c0_60, %c0_61] : memref<1x32xf32, #tpu.memory_space<vmem>>, vector<1x32xf32>
    %c0_62 = arith.constant 0 : index
    %c0_63 = arith.constant 0 : index
    %136 = vector.load %arg14[%c0_62, %c0_63] : memref<1x32xf32, #tpu.memory_space<vmem>>, vector<1x32xf32>
    %cst_64 = arith.constant dense<0.000000e+00> : vector<8xf32>
    %137 = vector.multi_reduction <add>, %134, %cst_64 [1] : vector<8x32xf32> to vector<8xf32>
    %138 = vector.shape_cast %137 : vector<8xf32> to vector<8x1xf32>
    %cst_65 = arith.constant 3.200000e+01 : f32
    %139 = vector.broadcast %cst_65 : f32 to vector<8x1xf32>
    %140 = arith.divf %138, %139 : vector<8x1xf32>
    %141 = vector.broadcast %140 : vector<8x1xf32> to vector<8x32xf32>
    %142 = arith.subf %134, %141 : vector<8x32xf32>
    %143 = arith.mulf %142, %142 : vector<8x32xf32>
    %cst_66 = arith.constant dense<0.000000e+00> : vector<8xf32>
    %144 = vector.multi_reduction <add>, %143, %cst_66 [1] : vector<8x32xf32> to vector<8xf32>
    %145 = vector.shape_cast %144 : vector<8xf32> to vector<8x1xf32>
    %cst_67 = arith.constant 0.0322580636 : f32
    %146 = vector.broadcast %cst_67 : f32 to vector<8x1xf32>
    %147 = arith.mulf %145, %146 : vector<8x1xf32>
    %148 = math.sqrt %147 : vector<8x1xf32>
    %149 = vector.broadcast %135 : vector<1x32xf32> to vector<8x32xf32>
    %150 = arith.mulf %149, %142 : vector<8x32xf32>
    %cst_68 = arith.constant 9.99999997E-7 : f32
    %151 = vector.broadcast %cst_68 : f32 to vector<8x1xf32>
    %152 = arith.addf %148, %151 : vector<8x1xf32>
    %153 = vector.broadcast %152 : vector<8x1xf32> to vector<8x32xf32>
    %154 = arith.divf %150, %153 : vector<8x32xf32>
    %155 = vector.broadcast %136 : vector<1x32xf32> to vector<8x32xf32>
    %156 = arith.addf %154, %155 : vector<8x32xf32>
    %c0_69 = arith.constant 0 : index
    %c0_70 = arith.constant 0 : index
    %157 = vector.load %arg15[%c0_69, %c0_70] : memref<32x64xf32, #tpu.memory_space<vmem>>, vector<32x64xf32>
    %cst_71 = arith.constant dense<0.000000e+00> : vector<8x64xf32>
    %158 = tpu.matmul %156, %157, %cst_71 {dimension_numbers = #tpu.dot_dimension_numbers<[1], [0], [0], [1], [0, 0, 1, 1], [], []>} : vector<8x32xf32>, vector<32x64xf32>, vector<8x64xf32> -> vector<8x64xf32>
    %c0_72 = arith.constant 0 : index
    %c0_73 = arith.constant 0 : index
    %159 = vector.load %arg16[%c0_72, %c0_73] : memref<1x64xf32, #tpu.memory_space<vmem>>, vector<1x64xf32>
    %160 = vector.broadcast %159 : vector<1x64xf32> to vector<8x64xf32>
    %161 = arith.addf %158, %160 : vector<8x64xf32>
    %cst_74 = arith.constant 0.707106769 : f32
    %162 = vector.broadcast %cst_74 : f32 to vector<8x64xf32>
    %163 = arith.mulf %161, %162 : vector<8x64xf32>
    %164 = math.absf %163 : vector<8x64xf32>
    %cst_75 = arith.constant 0.327591091 : f32
    %165 = vector.broadcast %cst_75 : f32 to vector<8x64xf32>
    %166 = arith.mulf %165, %164 : vector<8x64xf32>
    %cst_76 = arith.constant 1.000000e+00 : f32
    %167 = vector.broadcast %cst_76 : f32 to vector<8x64xf32>
    %168 = arith.addf %167, %166 : vector<8x64xf32>
    %cst_77 = arith.constant 1.000000e+00 : f32
    %169 = vector.broadcast %cst_77 : f32 to vector<8x64xf32>
    %170 = arith.divf %169, %168 : vector<8x64xf32>
    %cst_78 = arith.constant 1.06140542 : f32
    %171 = vector.broadcast %cst_78 : f32 to vector<8x64xf32>
    %172 = arith.mulf %170, %171 : vector<8x64xf32>
    %cst_79 = arith.constant -1.45315206 : f32
    %173 = vector.broadcast %cst_79 : f32 to vector<8x64xf32>
    %174 = arith.addf %173, %172 : vector<8x64xf32>
    %175 = arith.mulf %170, %174 : vector<8x64xf32>
    %cst_80 = arith.constant 1.42141378 : f32
    %176 = vector.broadcast %cst_80 : f32 to vector<8x64xf32>
    %177 = arith.addf %176, %175 : vector<8x64xf32>
    %178 = arith.mulf %170, %177 : vector<8x64xf32>
    %cst_81 = arith.constant -0.284496725 : f32
    %179 = vector.broadcast %cst_81 : f32 to vector<8x64xf32>
    %180 = arith.addf %179, %178 : vector<8x64xf32>
    %181 = arith.mulf %170, %180 : vector<8x64xf32>
    %cst_82 = arith.constant 0.254829586 : f32
    %182 = vector.broadcast %cst_82 : f32 to vector<8x64xf32>
    %183 = arith.addf %182, %181 : vector<8x64xf32>
    %184 = arith.mulf %170, %183 : vector<8x64xf32>
    %cst_83 = arith.constant 0.000000e+00 : f32
    %185 = vector.broadcast %cst_83 : f32 to vector<8x64xf32>
    %186 = arith.subf %185, %164 : vector<8x64xf32>
    %187 = arith.mulf %186, %164 : vector<8x64xf32>
    %188 = math.exp %187 : vector<8x64xf32>
    %189 = arith.mulf %184, %188 : vector<8x64xf32>
    %cst_84 = arith.constant 1.000000e+00 : f32
    %190 = vector.broadcast %cst_84 : f32 to vector<8x64xf32>
    %191 = arith.subf %190, %189 : vector<8x64xf32>
    %cst_85 = arith.constant 0.000000e+00 : f32
    %192 = vector.broadcast %cst_85 : f32 to vector<8x64xf32>
    %193 = arith.cmpf oge, %163, %192 : vector<8x64xf32>
    %cst_86 = arith.constant 0.000000e+00 : f32
    %194 = vector.broadcast %cst_86 : f32 to vector<8x64xf32>
    %195 = arith.subf %194, %191 : vector<8x64xf32>
    %196 = arith.select %193, %191, %195 : vector<8x64xi1>, vector<8x64xf32>
    %cst_87 = arith.constant 5.000000e-01 : f32
    %197 = vector.broadcast %cst_87 : f32 to vector<8x64xf32>
    %198 = arith.mulf %161, %197 : vector<8x64xf32>
    %cst_88 = arith.constant 1.000000e+00 : f32
    %199 = vector.broadcast %cst_88 : f32 to vector<8x64xf32>
    %200 = arith.addf %199, %196 : vector<8x64xf32>
    %201 = arith.mulf %198, %200 : vector<8x64xf32>
    %c0_89 = arith.constant 0 : index
    %c0_90 = arith.constant 0 : index
    %202 = vector.load %arg17[%c0_89, %c0_90] : memref<64x32xf32, #tpu.memory_space<vmem>>, vector<64x32xf32>
    %cst_91 = arith.constant dense<0.000000e+00> : vector<8x32xf32>
    %203 = tpu.matmul %201, %202, %cst_91 {dimension_numbers = #tpu.dot_dimension_numbers<[1], [0], [0], [1], [0, 0, 1, 1], [], []>} : vector<8x64xf32>, vector<64x32xf32>, vector<8x32xf32> -> vector<8x32xf32>
    %c0_92 = arith.constant 0 : index
    %c0_93 = arith.constant 0 : index
    %204 = vector.load %arg18[%c0_92, %c0_93] : memref<1x32xf32, #tpu.memory_space<vmem>>, vector<1x32xf32>
    %205 = vector.broadcast %204 : vector<1x32xf32> to vector<8x32xf32>
    %206 = arith.addf %203, %205 : vector<8x32xf32>
    %207 = arith.addf %134, %206 : vector<8x32xf32>
    %c0_94 = arith.constant 0 : index
    %c0_95 = arith.constant 0 : index
    %c0_96 = arith.constant 0 : index
    %208 = vector.load %arg19[%c0_94, %c0_95, %c0_96] : memref<1x8x32xf32, #tpu.memory_space<vmem>>, vector<1x8x32xf32>
    %209 = vector.shape_cast %208 : vector<1x8x32xf32> to vector<8x32xf32>
    %210 = vector.shape_cast %207 : vector<8x32xf32> to vector<1x8x32xf32>
    tpu.vector_store %arg19[%c0_94, %c0_95, %c0_96], %210 {strides = array<i32>} : memref<1x8x32xf32, #tpu.memory_space<vmem>>, vector<1x8x32xf32>,
    return
  }
  func.func @transform_0(%arg0: i32) -> (i32, i32, i32) {
    %c0_i32 = arith.constant 0 : i32
    %c0_i32_0 = arith.constant 0 : i32
    %c0_i32_1 = arith.constant 0 : i32
    return %arg0, %c0_i32, %c0_i32_0 : i32, i32, i32
  }
  func.func @transform_1(%arg0: i32) -> (i32, i32, i32) {
    %c0_i32 = arith.constant 0 : i32
    %c0_i32_0 = arith.constant 0 : i32
    %c0_i32_1 = arith.constant 0 : i32
    return %arg0, %c0_i32, %c0_i32_0 : i32, i32, i32
  }
  func.func @transform_2(%arg0: i32) -> (i32, i32) {
    %c0_i32 = arith.constant 0 : i32
    %c0_i32_0 = arith.constant 0 : i32
    %c0_i32_1 = arith.constant 0 : i32
    return %c0_i32, %c0_i32_0 : i32, i32
  }
  func.func @transform_3(%arg0: i32) -> (i32, i32) {
    %c0_i32 = arith.constant 0 : i32
    %c0_i32_0 = arith.constant 0 : i32
    %c0_i32_1 = arith.constant 0 : i32
    return %c0_i32, %c0_i32_0 : i32, i32
  }
  func.func @transform_4(%arg0: i32) -> (i32, i32) {
    %c0_i32 = arith.constant 0 : i32
    %c0_i32_0 = arith.constant 0 : i32
    %c0_i32_1 = arith.constant 0 : i32
    return %c0_i32, %c0_i32_0 : i32, i32
  }
  func.func @transform_5(%arg0: i32) -> (i32, i32) {
    %c0_i32 = arith.constant 0 : i32
    %c0_i32_0 = arith.constant 0 : i32
    %c0_i32_1 = arith.constant 0 : i32
    return %c0_i32, %c0_i32_0 : i32, i32
  }
  func.func @transform_6(%arg0: i32) -> (i32, i32) {
    %c0_i32 = arith.constant 0 : i32
    %c0_i32_0 = arith.constant 0 : i32
    %c0_i32_1 = arith.constant 0 : i32
    return %c0_i32, %c0_i32_0 : i32, i32
  }
  func.func @transform_7(%arg0: i32) -> (i32, i32) {
    %c0_i32 = arith.constant 0 : i32
    %c0_i32_0 = arith.constant 0 : i32
    %c0_i32_1 = arith.constant 0 : i32
    return %c0_i32, %c0_i32_0 : i32, i32
  }
  func.func @transform_8(%arg0: i32) -> (i32, i32) {
    %c0_i32 = arith.constant 0 : i32
    %c0_i32_0 = arith.constant 0 : i32
    %c0_i32_1 = arith.constant 0 : i32
    return %c0_i32, %c0_i32_0 : i32, i32
  }
  func.func @transform_9(%arg0: i32) -> (i32, i32) {
    %c0_i32 = arith.constant 0 : i32
    %c0_i32_0 = arith.constant 0 : i32
    %c0_i32_1 = arith.constant 0 : i32
    return %c0_i32, %c0_i32_0 : i32, i32
  }
  func.func @transform_10(%arg0: i32) -> (i32, i32) {
    %c0_i32 = arith.constant 0 : i32
    %c0_i32_0 = arith.constant 0 : i32
    %c0_i32_1 = arith.constant 0 : i32
    return %c0_i32, %c0_i32_0 : i32, i32
  }
  func.func @transform_11(%arg0: i32) -> (i32, i32) {
    %c0_i32 = arith.constant 0 : i32
    %c0_i32_0 = arith.constant 0 : i32
    %c0_i32_1 = arith.constant 0 : i32
    return %c0_i32, %c0_i32_0 : i32, i32
  }
  func.func @transform_12(%arg0: i32) -> (i32, i32) {
    %c0_i32 = arith.constant 0 : i32
    %c0_i32_0 = arith.constant 0 : i32
    %c0_i32_1 = arith.constant 0 : i32
    return %c0_i32, %c0_i32_0 : i32, i32
  }
  func.func @transform_13(%arg0: i32) -> (i32, i32) {
    %c0_i32 = arith.constant 0 : i32
    %c0_i32_0 = arith.constant 0 : i32
    %c0_i32_1 = arith.constant 0 : i32
    return %c0_i32, %c0_i32_0 : i32, i32
  }
  func.func @transform_14(%arg0: i32) -> (i32, i32) {
    %c0_i32 = arith.constant 0 : i32
    %c0_i32_0 = arith.constant 0 : i32
    %c0_i32_1 = arith.constant 0 : i32
    return %c0_i32, %c0_i32_0 : i32, i32
  }
  func.func @transform_15(%arg0: i32) -> (i32, i32) {
    %c0_i32 = arith.constant 0 : i32
    %c0_i32_0 = arith.constant 0 : i32
    %c0_i32_1 = arith.constant 0 : i32
    return %c0_i32, %c0_i32_0 : i32, i32
  }
  func.func @transform_16(%arg0: i32) -> (i32, i32) {
    %c0_i32 = arith.constant 0 : i32
    %c0_i32_0 = arith.constant 0 : i32
    %c0_i32_1 = arith.constant 0 : i32
    return %c0_i32, %c0_i32_0 : i32, i32
  }
  func.func @transform_17(%arg0: i32) -> (i32, i32) {
    %c0_i32 = arith.constant 0 : i32
    %c0_i32_0 = arith.constant 0 : i32
    %c0_i32_1 = arith.constant 0 : i32
    return %c0_i32, %c0_i32_0 : i32, i32
  }
  func.func @transform_18(%arg0: i32) -> (i32, i32, i32) {
    %c0_i32 = arith.constant 0 : i32
    %c0_i32_0 = arith.constant 0 : i32
    %c0_i32_1 = arith.constant 0 : i32
    return %arg0, %c0_i32, %c0_i32_0 : i32, i32, i32
  }
}

</mosaic_0001>

<bundles_post_ra>
// kernel: tpu_custom_call.1
= control target key start
LH: loop header
LB: loop body
LE: loop exit
PB: predicated region body
PF: predicated region fallthrough
CT: control target
= control target key end

     0   :  { %s3455_s0 = inlined_call_operand.hbm [shape: f32[2,8,32], index: 0, kind: input, shape index: {}]   ;;  %s3456_s1 = inlined_call_operand.hbm [shape: f32[2,8,32], index: 1, kind: input, shape index: {}]   ;;  %s3457_s2 = inlined_call_operand.vmem [shape: f32[1,32], index: 2, kind: input, shape index: {}]   ;;  %s3458_s3 = inlined_call_operand.vmem [shape: f32[1,32], index: 3, kind: input, shape index: {}]   ;;  %s3459_s4 = inlined_call_operand.vmem [shape: f32[32,32], index: 4, kind: input, shape index: {}]   ;;  %s3460_s5 = inlined_call_operand.vmem [shape: f32[1,32], index: 5, kind: input, shape index: {}]   ;;  %s3461_s6 = inlined_call_operand.vmem [shape: f32[32,32], index: 6, kind: input, shape index: {}]   ;;  %s3462_s7 = inlined_call_operand.vmem [shape: f32[1,32], index: 7, kind: input, shape index: {}]   ;;  %s3463_s8 = inlined_call_operand.vmem [shape: f32[32,32], index: 8, kind: input, shape index: {}]   ;;  %s3464_s9 = inlined_call_operand.vmem [shape: f32[1,32], index: 9, kind: input, shape index: {}]   ;;  %s3465_s10 = inlined_call_operand.hbm [shape: f32[32,32], index: 10, kind: input, shape index: {}]   ;;  %s3466_s11 = inlined_call_operand.vmem [shape: f32[1,32], index: 11, kind: input, shape index: {}]   ;;  %s3467_s12 = inlined_call_operand.vmem [shape: f32[1,32], index: 12, kind: input, shape index: {}]   ;;  %s3468_s13 = inlined_call_operand.vmem [shape: f32[1,32], index: 13, kind: input, shape index: {}]   ;;  %s3469_s14 = inlined_call_operand.hbm [shape: f32[32,64], index: 14, kind: input, shape index: {}]   ;;  %s3470_s15 = inlined_call_operand.vmem [shape: f32[1,64], index: 15, kind: input, shape index: {}]   ;;  %s3471_s16 = inlined_call_operand.vmem [shape: f32[64,32], index: 16, kind: input, shape index: {}]   ;;  %s3472_s17 = inlined_call_operand.vmem [shape: f32[1,32], index: 17, kind: input, shape index: {}]   ;;  %s3473_s18 = inlined_call_operand.hbm [shape: f32[2,8,32], index: 18, kind: output, shape index: {}]  }
   0x1   :  { %3489 = sst [smem:[#allocation22_spill]] %s3455_s0 }
   0x2   :  { %3490 = sst [smem:[#allocation23_spill]] %s3456_s1 }
   0x3   :  { %3491 = sst [smem:[#allocation24_spill]] %s3457_s2 }
   0x4   :  { %3492 = sst [smem:[#allocation25_spill]] %s3465_s10 }
   0x5   :  { %3493 = sst [smem:[#allocation26_spill]] %s3467_s12 }
   0x6   :  { %3494 = sst [smem:[#allocation27_spill]] %s3468_s13 }
   0x7   :  { %3495 = sst [smem:[#allocation28_spill]] %s3469_s14 }
   0x8   :  { %3496 = sst [smem:[#allocation29_spill]] %s3470_s15 }
   0x9   :  { %3497 = sst [smem:[#allocation30_spill]] %s3471_s16 }
   0xa   :  { %3498 = sst [smem:[#allocation31_spill]] %s3472_s17 }
   0xb   :  { %3499 = sst [smem:[#allocation32_spill]] %s3473_s18 }
   0xc   :  { %23 = vsyncpa [#allocation3], 0 }
   0xd   :  { %25 = vsyncpa [#allocation3 + $0x1], 0 }
   0xe   :  { %26 = vsyncpa [#allocation6], 0 }
   0xf   :  { %28 = vsyncpa [#allocation6 + $0x1], 0 }
  0x10   :  { %29 = vsyncpa [#allocation9], 0 }
  0x11   :  { %30 = vsyncpa [#allocation4], 0 }
  0x12   :  { %32 = vsyncpa [#allocation4 + $0x1], 0  ;;  %s2963_s27 = smov 0   ;;  %s2965_s28 = smov 0  }
  0x13   :  { %s2967_s29 = smov 0   ;;  %s2969_s30 = smov 0  }
  0x14 LB: > { %3500 = sst [smem:[#allocation16_spill]] %s2841_s27  ;;  %s2984_s0 = sadd.s32 4294967295, %s2853_s30   ;;  %s2853_s30 = sphi %s2969_s30, %s3536_s30   ;;  %s2849_s29 = sphi %s2967_s29, %s3541_s29   ;;  %s2845_s28 = sphi %s2965_s28, %s3540_s28   ;;  %s2841_s27 = sphi %s2963_s27, %s3539_s27  }
  0x15   : > { %3501 = sst [smem:[#allocation17_spill]] %s2849_s29  ;;  %s2285_s19 = sadd.s32 4294967294, %s2853_s30  }
  0x16   : > { %p58_p0 = scmp.ne.s32.totalorder %s2845_s28, %s2841_s27  ;;  %p3479_p1 = scmp.eq.s32.totalorder %s2984_s0, 0 }
  0x17   : > { %p450_p3 = scmp.eq.s32.totalorder %s2285_s19, 1  ;;  %p2286_p5 = scmp.ge.s32.totalorder %s2853_s30, 1 }
  0x18   : > { %p2993_p4 = por %p3479_p1, %p58_p0  ;;  %p457_p7 = scmp.lt.s32.totalorder %s2853_s30, 3 }
  0x19   : > { %p2998_p6 = por %p450_p3, %p58_p0  ;;  %s2855_s22 = smov [#allocation7]  }
  0x1a   : > { %s3502_s1 = scalar_select %p2993_p4, 1, 0 }
  0x1b   : > { %s3503_s20 = scalar_select %p2998_p6, 1, 0 }
  0x1c   : > { %p3003_p8 = pnand %p2286_p5, %p457_p7  ;;  %s493_s2 = sshll.u32 %s2855_s22, 4  ;;  %s3007_s2 = int_to_ptr.vmem [resolvable:$true] %s493_s2 }
  0x1d   : > { %3504 = sst [smem:[#allocation18_spill]] %s3503_s20  ;;  %s2856_s24 = smov [#allocation8]  }
  0x1e   : > { %s3505_s21 = scalar_select %p3003_p8, 1, 0 }
  0x1f   : > { %p2561_p9 = pneg %p3003_p8  ;;  %s515_s25 = sshll.u32 %s2856_s24, 4  ;;  %s3018_s25 = int_to_ptr.vmem [resolvable:$true] %s515_s25 }
  0x20   : > { %s3507_s10 = sld [smem:[#allocation25_spill]] }
  0x21   : > { %p3014_p11 = pnand %p2561_p9, %p3479_p1 }
  0x23   : > { %p2661_p13 = pneg %p3014_p11 }
  0x26   : > { %s2659_s22 = scalar_lea.hbm %s3507_s10, 512 }
  0x27   : > { %p2660_p12 = scmp.ne.s32.totalorder %s3507_s10, %s2659_s22  ;;  %p2666_p5 = scmp.lt.u32.totalorder %s2659_s22, %s3507_s10 }
  0x29   : > { %p2662_p0 = pnand %p2661_p13, %p2660_p12 }
  0x2b   : > { %p2663_p3 = pneg %p2662_p0 }
  0x2d   : > { %p2668_p7 = pnand %p2666_p5, %p2663_p3 }
  0x2f   : > { %2671 = shalt.err (!%p2668_p7)
}
  0x30   : > { %s2672_s24 = scalar_lea.vmem %s3007_s2, 512  ;;  %p2680_p2 = scmp.lt.s32.totalorder %s3007_s2, %s3007_s2 }
  0x31   : > { %p2673_p9 = scmp.ne.s32.totalorder %s3007_s2, %s2672_s24  ;;  %p2681_p12 = scmp.lt.s32.totalorder %s2672_s24, %s2672_s24 }
  0x33   : > { %p2675_p10 = pnand %p2673_p9, %p2661_p13  ;;  %p2682_p0 = por %p2681_p12, %p2680_p2 }
  0x35   : > { %p2676_p1 = pneg %p2675_p10 }
  0x37   : > { %p2683_p6 = pnand %p2682_p0, %p2676_p1 }
  0x39   : > { %2686 = shalt.err (!%p2683_p6)
}
  0x3a   : > { %s2857_s17 = smov 128   ;;  %s2858_s18 = smov 8  }
  0x3b   : > { %2564 = dma.hbm_to_vmem [thread:$0]  (!%p3014_p11), %s3507_s10, 512, %s3007_s2, [#allocation6], %s2857_s17, %s2857_s17, %s2858_s18  }
  0x3c   : > { %s3508_s14 = sld [smem:[#allocation28_spill]] }
  0x42   : > { %s2687_s22 = scalar_lea.hbm %s3508_s14, 512 }
  0x43   : > { %p2688_p2 = scmp.ne.s32.totalorder %s3508_s14, %s2687_s22  ;;  %p2694_p10 = scmp.lt.u32.totalorder %s2687_s22, %s3508_s14 }
  0x45   : > { %p2690_p1 = pnand %p2688_p2, %p2661_p13 }
  0x47   : > { %p2691_p6 = pneg %p2690_p1 }
  0x49   : > { %p2696_p3 = pnand %p2694_p10, %p2691_p6 }
  0x4b   : > { %2699 = shalt.err (!%p2696_p3)
}
  0x4c   : > { %s2700_s2 = scalar_lea.vmem %s3018_s25, 512  ;;  %p2708_p12 = scmp.lt.s32.totalorder %s3018_s25, %s3018_s25 }
  0x4d   : > { %p2701_p5 = scmp.ne.s32.totalorder %s3018_s25, %s2700_s2  ;;  %p2709_p0 = scmp.lt.s32.totalorder %s2700_s2, %s2700_s2 }
  0x4f   : > { %p2703_p7 = pnand %p2701_p5, %p2661_p13  ;;  %p2710_p2 = por %p2709_p0, %p2708_p12 }
  0x51   : > { %p2704_p9 = pneg %p2703_p7 }
  0x53   : > { %p2711_p1 = pnand %p2710_p2, %p2704_p9 }
  0x55   : > { %2714 = shalt.err (!%p2711_p1)
}
  0x56   : > { %2567 = dma.hbm_to_vmem [thread:$0]  (!%p3014_p11), %s3508_s14, 512, %s3018_s25, [#allocation9], %s2857_s17, %s2857_s17, %s2858_s18  }
  0x57   : > { %s3073_s16 = sadd.s32 1, %s2853_s30   ;;  %s45_s23 = sadd.s32 1, %s2849_s29 }
  0x58   : > { %3509 = sst [smem:[#allocation19_spill]] %s3073_s16  ;;  %s42_s27 = ssub.s32 %s2853_s30, %s3073_s16 }
  0x59   : > { %p52_p13 = scmp.ne.s32.totalorder %s2849_s29, %s2845_s28  ;;  %p43_p6 = scmp.eq.s32.totalorder %s42_s27, 0 }
  0x5a   : > { %p53_p10 = scmp.eq.s32.totalorder %s2853_s30, 0  ;;  %p3510_p3 = scmp.eq.s32.totalorder %s2984_s0, 1 }
  0x5b   : > { %p2581_p7 = scmp.lt.s32.totalorder %s2853_s30, 2  ;;  %s538_s19 = sand.u32 1, %s2849_s29  }
  0x5c   : > { %p3083_p5 = por %p3510_p3, %p52_p13  ;;  %p54_p9 = por %p53_p10, %p52_p13 }
  0x5d   : > { %s3089_s26 = scalar_select %p43_p6, %s2849_s29, %s45_s23  }
  0x5e   : > { %s3511_s20 = scalar_select %p3083_p5, 1, 0 }
  0x5f   : > { %3513 = sst [smem:[#allocation21_spill]] %s3089_s26  ;;  %s3092_s25 = sshll.u32 %s538_s19, 3 }
  0x60   : > { %3512 = sst [smem:[#allocation20_spill]] %s3511_s20  ;;  %s2291_s17 = sshll.u32 %s2853_s30, 7 }
  0x61   : > { %s3514_s24 = sld [smem:[#allocation22_spill]]  ;;  %s542_s13 = scalar_lea.vmem [#allocation2], %s3092_s25 }
  0x62   : > { %s549_s15 = sshll.u32 %s542_s13, 4  ;;  %p3103_p11 = pnand %p2581_p7, %p54_p9  ;;  %s3101_s15 = int_to_ptr.vmem [resolvable:$true] %s549_s15 }
  0x63   : > { %s3516_s14 = sld [smem:[#allocation23_spill]]  ;;  %s556_s22 = sand.u32 1, %s2853_s30  }
  0x64   : > { %s539_s26 = scalar_lea.sflag [#allocation3], %s538_s19  ;;  %p2717_p0 = pneg %p3103_p11 }
  0x67   : > { %s3098_s2 = scalar_lea.hbm %s3514_s24, %s2291_s17  ;;  %s2720_s20 = scalar_lea.hbm %s3514_s24, 256 }
  0x68   : > { %s2715_s29 = scalar_lea.hbm %s3098_s2, 128  ;;  %p2721_p13 = scmp.lt.u32.totalorder %s3098_s2, %s3514_s24 }
  0x69   : > { %s3110_s18 = scalar_lea.hbm %s3516_s14, %s2291_s17  ;;  %p2716_p12 = scmp.ne.s32.totalorder %s3098_s2, %s2715_s29 }
  0x6a   : > { %p2722_p6 = scmp.lt.u32.totalorder %s2720_s20, %s2715_s29  ;;  %p2724_p3 = scmp.lt.u32.totalorder %s2715_s29, %s3098_s2 }
  0x6b   : > { %p2718_p2 = pnand %p2717_p0, %p2716_p12 }
  0x6c   : > { %p2723_p10 = por %p2722_p6, %p2721_p13 }
  0x6d   : > { %p2719_p1 = pneg %p2718_p2 }
  0x6e   : > { %p2725_p7 = por %p2724_p3, %p2723_p10 }
  0x70   : > { %p2726_p9 = pnand %p2725_p7, %p2719_p1 }
  0x72   : > { %2729 = shalt.err (!%p2726_p9)
}
  0x73   : > { %s2730_s19 = scalar_lea.vmem %s3101_s15, 128  ;;  %s2859_s16 = smov [#allocation2]  }
  0x74   : > { %p2731_p12 = scmp.ne.s32.totalorder %s3101_s15, %s2730_s19  ;;  %s2735_s17 = sshll.u32 %s2859_s16, 4  ;;  %s2736_s17 = int_to_ptr.vmem [resolvable:$false] %s2735_s17 }
  0x75   : > { %s2737_s12 = scalar_lea.vmem %s2736_s17, 256  ;;  %p2738_p4 = scmp.lt.s32.totalorder %s3101_s15, %s2736_s17 }
  0x76   : > { %p2733_p2 = pnand %p2731_p12, %p2717_p0  ;;  %p2739_p13 = scmp.lt.s32.totalorder %s2737_s12, %s2730_s19 }
  0x78   : > { %p2734_p5 = pneg %p2733_p2  ;;  %p2740_p6 = por %p2739_p13, %p2738_p4 }
  0x7a   : > { %p2741_p10 = pnand %p2740_p6, %p2734_p5 }
  0x7c   : > { %2744 = shalt.err (!%p2741_p10)
}
  0x7d   : > { %2571 = dma.hbm_to_vmem [thread:$0]  (!%p3103_p11), %s3098_s2, 128, %s3101_s15, %s539_s26  }
  0x7e   : > { %s560_s29 = scalar_lea.vmem [#allocation5], %s3092_s25  ;;  %s557_s27 = scalar_lea.sflag [#allocation6], %s556_s22 }
  0x7f   : > { %s567_s20 = sshll.u32 %s560_s29, 4  ;;  %s2745_s13 = scalar_lea.hbm %s3110_s18, 128  ;;  %s568_s20 = int_to_ptr.vmem [resolvable:$true] %s567_s20 }
  0x80   : > { %p2746_p4 = scmp.ne.s32.totalorder %s3110_s18, %s2745_s13  ;;  %s2750_s16 = scalar_lea.hbm %s3516_s14, 256 }
  0x81   : > { %p2751_p3 = scmp.lt.u32.totalorder %s3110_s18, %s3516_s14  ;;  %p2752_p7 = scmp.lt.u32.totalorder %s2750_s16, %s2745_s13 }
  0x82   : > { %p2748_p5 = pnand %p2746_p4, %p2717_p0  ;;  %p2754_p12 = scmp.lt.u32.totalorder %s2745_s13, %s3110_s18 }
  0x83   : > { %p2753_p9 = por %p2752_p7, %p2751_p3 }
  0x84   : > { %p2749_p1 = pneg %p2748_p5 }
  0x85   : > { %p2755_p2 = por %p2754_p12, %p2753_p9 }
  0x87   : > { %p2756_p13 = pnand %p2755_p2, %p2749_p1 }
  0x89   : > { %2759 = shalt.err (!%p2756_p13)
}
  0x8a   : > { %s2760_s26 = scalar_lea.vmem %s568_s20, 128  ;;  %s2860_s25 = smov [#allocation5]  }
  0x8b   : > { %p2761_p6 = scmp.ne.s32.totalorder %s568_s20, %s2760_s26  ;;  %s2765_s2 = sshll.u32 %s2860_s25, 4  ;;  %s2766_s2 = int_to_ptr.vmem [resolvable:$false] %s2765_s2 }
  0x8c   : > { %s2767_s15 = scalar_lea.vmem %s2766_s2, 256  ;;  %p2768_p5 = scmp.lt.s32.totalorder %s568_s20, %s2766_s2 }
  0x8d   : > { %p2763_p10 = pnand %p2761_p6, %p2717_p0  ;;  %p2769_p8 = scmp.lt.s32.totalorder %s2767_s15, %s2760_s26 }
  0x8f   : > { %p2764_p4 = pneg %p2763_p10  ;;  %p2770_p3 = por %p2769_p8, %p2768_p5 }
  0x91   : > { %p2771_p7 = pnand %p2770_p3, %p2764_p4 }
  0x93   : > { %2774 = shalt.err (!%p2771_p7)
}
  0x94   : > { %2574 = dma.hbm_to_vmem [thread:$0]  (!%p3103_p11), %s3110_s18, 128, %s568_s20, %s557_s27  }
  0x95   : > { %p3517_p1 = scmp.ne.s32.totalorder %s3505_s21, 0 }
  0x96   : > { %s3163_s22 = sand.u32 (!%p3517_p1), 1, %s2845_s28   ;;  %p3518_p8 = scmp.ne.s32.totalorder (!%p3517_p1), %s3502_s1, 0 }
  0x97   : > { %576 = sbr.rel (%p3517_p1) target bundleno = 3908 (0xf44), region = 92  ;;  %s3166_s29 = sshll.u32 (!%p3517_p1), %s3163_s22, 3 }
  0x98   : > { %s579_s13 = scalar_lea.sflag (!%p3517_p1), [#allocation3], %s3163_s22  ;;  %s582_s10 = scalar_lea.vmem (!%p3517_p1), [#allocation2], %s3166_s29 }
  0x9e   : > { %2820 = dma.done.wait (%p3518_p8), %s579_s13, 128  }
  0x9f   : > { %2822 = vsyncadd (%p3518_p8), %s579_s13, 4294967168  ;;  %s587_s21 = sand.u32 1, %s2984_s0   ;;  %s591_s18 = scalar_lea.vmem [#allocation5], %s3166_s29 }
  0xa0   : > { %s588_s23 = scalar_lea.sflag [#allocation6], %s587_s21 }
  0xa1   : > { %2824 = dma.done.wait (%p3518_p8), %s588_s23, 128  }
  0xa2   : > { %2826 = vsyncadd (%p3518_p8), %s588_s23, 4294967168  ;;  %p3519_p11 = scmp.eq.s32.totalorder %s2984_s0, 0 }
  0xa4   : > { %2828 = dma.done.wait (%p3519_p11), [#allocation6], 512   ;;  %p3520_p0 = pmov %p3519_p11 }
  0xa6   : > { %2830 = vsyncadd (%p3520_p0), [#allocation6], 4294966784  ;;  %p3521_p9 = pmov %p3520_p0 }
  0xa7   : > { %p3522_p12 = pmov %p3520_p0 }
  0xa8   : > { %2832 = dma.done.wait (%p3521_p9), [#allocation9], 512  }
  0xa9   : > { %2834 = vsyncadd (%p3522_p12), [#allocation9], 4294966784  ;;  %v2861_v0 = vmov 0.0|0.0   ;;  %vm2862_vm0 = vmmov 0   ;;  %v2863_v1 = vmov 0.0   ;;  %vm661_vm1 = vcmask 261120  }
  0xaa   : > { %2511 = vmatprep.subr.bf16.mxu1 %v2861_v0  ;;  %2396 = vmatprep.mubr.msk.f32.mxu1 %vm2862_vm0, %v2863_v1  ;;  %v3194_v2 = vld [vmem:[%s582_s10] sm:$0xff]  ;;  %v699_v7 = vld [vmem:[%s3459_s4 + $0x10] sm:$0xff]  ;;  %v700_v8 = vld [vmem:[%s3459_s4 + $0x18] sm:$0xff]  ;;  %vm866_vm2 = vcmask 64512   ;;  %s2864_s15 = smov 120   ;;  %s3523_s21 = sld [smem:[#allocation24_spill]] }
  0xab   : > { %2410 = vmatprep.subr.mxu0 %v2863_v1  ;;  %2412 = vmatprep.mubr.msk.f32.mxu0 %vm2862_vm0, %v2863_v1  ;;  %v697_v3 = vld [vmem:[%s3459_s4] sm:$0xff]  ;;  %v698_v4 = vld [vmem:[%s3459_s4 + $0x8] sm:$0xff]  ;;  %v662_v5 = vsel %vm661_vm1, %v3194_v2, 0.0  ;;  %v2515_v9 = vpack.c.bf16 %v700_v8, %v699_v7  ;;  %v658_v10 = vld [vmem:[%s591_s18] sm:$0xff]  ;;  %s2865_s25 = smov 112   ;;  %s2866_s18 = smov 104  }
  0xac   : > { %v2512_v6 = vpack.c.bf16 %v698_v4, %v697_v3  ;;  %663 = vadd.xlane.f32.xlu0 %v662_v5  ;;  %v2302_v16 = vld [vmem:[%s3460_s5] ss:$0 sm:$0xff]  ;;  %v782_v36 = vld [vmem:[%s3461_s6 + $0x8] sm:$0xff]  ;;  %v783_v37 = vld [vmem:[%s3461_s6 + $0x10] sm:$0xff]  ;;  %s3524_s13 = sld [smem:[#allocation26_spill]]  ;;  %s3526_s1 = sld [smem:[#allocation30_spill]] }
  0xad   : > { %v2301_v31 = vld [vmem:[%s3458_s3] ss:$0 sm:$0xff]  ;;  %v784_v39 = vld [vmem:[%s3461_s6 + $0x18] sm:$0xff]  ;;  %s3527_s27 = sld [smem:[#allocation29_spill]]  ;;  %vm2083_vm8 = vcmask 523264   ;;  %s3528_s19 = sld [smem:[#allocation20_spill]] }
  0xae   : > { %2513 = vmatpush3.bf16.msra.mxu1 %v2512_v6  ;;  %v781_v35 = vld [vmem:[%s3461_s6] sm:$0xff]  ;;  %v2521_v40 = vpack.c.bf16 %v784_v39, %v783_v37  ;;  %v863_v6 = vld [vmem:[%s3463_s8 + $0x8] sm:$0xff]  ;;  %s3529_s12 = sld [smem:[#allocation31_spill]]  ;;  %s2332_s26 = sshll.u32 %s2984_s0, 7 }
  0xaf   : > { %2514 = vmatprep.subr.bf16.mxu1 %v2861_v0  ;;  %v2518_v38 = vpack.c.bf16 %v782_v36, %v781_v35  ;;  %v2304_v53 = vld [vmem:[%s3462_s7] ss:$0 sm:$0xff]  ;;  %s2160_s23 = scalar_lea.sflag [#allocation4], %s3163_s22 }
  0xb0   : > { %v2300_v28 = vld [vmem:[%s3523_s21] ss:$0 sm:$0xff]  ;;  %s3530_s21 = sld [smem:[#allocation32_spill]] }
  0xb2   : > { %2516 = vmatpush3.bf16.msra.mxu1 %v2515_v9 }
  0xb3   : > { %2517 = vmatprep.subr.bf16.mxu1 %v2861_v0  ;;  %p3531_p13 = scmp.ne.s32.totalorder %s3528_s19, 0 }
  0xb5   : > { %2397 = vmatmul.mubr.msk.f32.vlgmr.msra.gmra.mrb[0].mxu1 %vm661_vm1, %v658_v10 }
  0xb6   : > { %2407 = vmatprep.mubr.msk.f32.mxu1 %vm2862_vm0, %v2863_v1  ;;  %2519 = vmatpush3.bf16.msra.mxu1 %v2518_v38 }
  0xb7   : > { %2520 = vmatprep.subr.bf16.mxu1 %v2861_v0 }
  0xba   : > { %2522 = vmatpush3.bf16.msra.mxu1 %v2521_v40 }
  0xbb   : > { %2415 = vmatprep.subr.mxu1 %v2863_v1 }
  0xbd   : > { %2408 = vmatmul.mubr.msk.f32.vlgmr.msra.gmra.mrb[2].mxu1 %vm661_vm1, %v658_v10 }
  0xbe   : > { %2417 = vmatprep.mubr.msk.f32.mxu1 %vm2862_vm0, %v2863_v1 }
 0x139   : > { %v664_v11 = vpop.xlane.xlu0 %663 }
 0x13a   : > { %v666_v12 = vmul.f32 0.03125, %v664_v11  ;;  %v862_v11 = vld [vmem:[%s3463_s8] sm:$0xff] }
 0x13c   : > { %v667_v13 = vsub.f32 %v3194_v2, %v666_v12 }
 0x13e   : > { %v668_v14 = vmul.f32 %v667_v13, %v667_v13  ;;  %v686_v29 = vmul.f32 %v2300_v28, %v667_v13 }
 0x140   : > { %v669_v15 = vsel %vm661_vm1, %v668_v14, 0.0 }
 0x141   : > { %670 = vadd.xlane.f32.xlu0 %v669_v15 }
 0x188   : > { %v777_v17 = vpop.f32.mrb[0].mxu1 }
 0x189   : > { %v3220_v18 = vadd.f32 %v2302_v16, %v777_v17  ;;  %v2398_v19 = vpop.f32.mrb[1].mxu1 }
 0x18b   : > { %1030 = vrot.lane.b32.xlu1 %v3220_v18, %s2864_s15  ;;  %2411 = vmatpush3.xpose.msk.msra.mxu0 %vm866_vm2, %v3220_v18 }
 0x18c   : > { %2420 = vmatprep.subr.mxu0 %v2863_v1 }
 0x190   : > { %v858_v54 = vpop.f32.mrb[2].mxu1 }
 0x191   : > { %v3270_v55 = vadd.f32 %v2304_v53, %v858_v54  ;;  %v2409_v56 = vpop.f32.mrb[3].mxu1 }
 0x193   : > { %2416 = vmatpush3.msra.mxu1 %v3270_v55 }
 0x194   : > { %2425 = vmatprep.subr.mxu1 %v2863_v1 }
 0x1ce   : > { %v671_v20 = vpop.xlane.xlu0 %670 }
 0x1cf   : > { %v672_v21 = vmul.f32 0.032258064, %v671_v20 }
 0x1d1   : > { %2627 = vrsqrt.f32 %v672_v21  ;;  %vm675_vm3 = vcmp.eq.f32.partialorder %v672_v21, inf  ;;  %v678_v24 = vand.u32 2147483648, %v672_v21  ;;  %vm677_vm4 = vcmp.eq.f32.partialorder %v672_v21, 0.0 }
 0x1db   : > { %v2628_v22 = vpop.eup %2627 }
 0x1dc   : > { %v674_v23 = vmul.f32 %v2628_v22, %v672_v21 }
 0x1de   : > { %v676_v25 = vsel %vm675_vm3, %v672_v21, %v674_v23 }
 0x1df   : > { %v679_v26 = vsel %vm677_vm4, %v678_v24, %v676_v25 }
 0x1e0   : > { %v687_v27 = vadd.f32 1e-06, %v679_v26 }
 0x1e2   : > { %2629 = vrcp.f32 %v687_v27 }
 0x1ec   : > { %v2630_v30 = vpop.eup %2629 }
 0x1ed   : > { %v689_v32 = vmul.f32 %v2630_v30, %v686_v29 }
 0x1ef   : > { %v3233_v33 = vadd.f32 %v2301_v31, %v689_v32 }
 0x1f1   : > { %1028 = vrot.lane.b32.xlu1 %v3233_v33, %s2864_s15  ;;  %2413 = vmatmul.mubr.msk.f32.vlgmr.msra.gmra.mrb[0].mxu0 %vm866_vm2, %v3233_v33 }
 0x1f2   : > { %2422 = vmatprep.mubr.msk.f32.mxu0 %vm2862_vm0, %v2863_v1 }
 0x1fd   : > { %v1031_v34 = vpop.permute.xlu1 %1030 }
 0x1fe   : > { %2421 = vmatpush3.xpose.msk.msra.mxu0 %vm866_vm2, %v1031_v34 }
 0x1ff   : > { %2430 = vmatprep.subr.mxu0 %v2863_v1 }
 0x263   : > { %v1029_v41 = vpop.permute.xlu1 %1028 }
 0x264   : > { %2423 = vmatmul.mubr.msk.f32.vlgmr.msra.gmra.mrb[2].mxu0 %vm866_vm2, %v1029_v41 }
 0x265   : > { %2432 = vmatprep.mubr.msk.f32.mxu0 %vm2862_vm0, %v2863_v1  ;;  %2431 = vmatpush3.msra.mxu0 %v863_v6  ;;  %v2322_v6 = vld [vmem:[%s3464_s9] ss:$0 sm:$0xff] }
 0x266   : > { %2440 = vmatprep.subr.mxu0 %v2863_v1 }
 0x2c4   : > { %v939_v42 = vpop.f32.mrb[0].mxu0 }
 0x2c5   : > { %v943_v43 = vmul.f32 0.35355338, %v939_v42  ;;  %v2414_v44 = vpop.f32.mrb[1].mxu0 }
 0x2c7   : > { %v944_v45 = vsel %vm866_vm2, %v943_v43, -inf }
 0x2c8   : > { %945 = vmax.xlane.f32.xlu0 %v944_v45 }
 0x337   : > { %v1102_v46 = vpop.f32.mrb[2].mxu0 }
 0x338   : > { %v1106_v47 = vmul.f32 0.35355338, %v1102_v46  ;;  %v2424_v48 = vpop.f32.mrb[3].mxu0 }
 0x33a   : > { %v1107_v49 = vsel %vm866_vm2, %v1106_v47, -inf }
 0x33b   : > { %1108 = vmax.xlane.f32.xlu1 %v1107_v49 }
 0x34c   : > { %1341 = vrot.lane.b32.xlu1 %v3233_v33, %s2865_s25 }
 0x355   : > { %v946_v50 = vpop.xlane.xlu0 %945 }
 0x356   : > { %v947_v51 = vsub.f32 %v943_v43, %v946_v50 }
 0x358   : > { %v948_v52 = vmul.f32 1.442695, %v947_v51  ;;  %v865_v51 = vld [vmem:[%s3463_s8 + $0x18] sm:$0xff] }
 0x35a   : > { %2631 = vpow2.f32 %v948_v52 }
 0x364   : > { %v2632_v57 = vpop.eup %2631 }
 0x365   : > { %v950_v58 = vsel %vm866_vm2, %v2632_v57, 0.0 }
 0x366   : > { %951 = vadd.xlane.f32.xlu0 %v950_v58 }
 0x3c8   : > { %v1109_v59 = vpop.xlane.xlu1 %1108 }
 0x3c9   : > { %v1110_v60 = vsub.f32 %v1106_v47, %v1109_v59 }
 0x3cb   : > { %v1111_v61 = vmul.f32 1.442695, %v1110_v60  ;;  %v1830_v60 = vld [vmem:[#allocation7] sm:$0xff] }
 0x3cc   : > { %v1342_v17 = vpop.permute.xlu1 %1341 }
 0x3cd   : > { %2633 = vpow2.f32 %v1111_v61  ;;  %v1831_v61 = vld [vmem:[#allocation7 + $0x8] sm:$0xff] }
 0x3d7   : > { %v2634_v62 = vpop.eup %2633 }
 0x3d8   : > { %v1113_v63 = vsel %vm866_vm2, %v2634_v62, 0.0 }
 0x3d9   : > { %1114 = vadd.xlane.f32.xlu0 %v1113_v63  ;;  %v1832_v63 = vld [vmem:[#allocation7 + $0x10] sm:$0xff] }
 0x3ef   : > { %1119 = vrot.lane.b32.xlu0 %v3270_v55, %s2864_s15  ;;  %s3525_s15 = sld [smem:[#allocation27_spill]] }
 0x3f3   : > { %v952_v3 = vpop.xlane.xlu0 %951  ;;  %1343 = vrot.lane.b32.xlu0 %v3220_v18, %s2865_s25 }
 0x3f4   : > { %2635 = vrcp.f32 %v952_v3  ;;  %v1833_v3 = vld [vmem:[#allocation7 + $0x18] sm:$0xff] }
 0x3fe   : > { %v2636_v4 = vpop.eup %2635 }
 0x3ff   : > { %v954_v5 = vmul.f32 %v2636_v4, %v2632_v57  ;;  %v2527_v4 = vpack.c.bf16 %v1833_v3, %v1832_v63 }
 0x401   : > { %2418 = vmatmul.mubr.msk.f32.vlgmr.msra.gmra.mrb[4].mxu1 %vm866_vm2, %v954_v5 }
 0x402   : > { %2427 = vmatprep.mubr.msk.f32.mxu1 %vm2862_vm0, %v2863_v1 }
 0x466   : > { %v1115_v7 = vpop.xlane.xlu0 %1114 }
 0x467   : > { %2637 = vrcp.f32 %v1115_v7 }
 0x46a   : > { %v1120_v8 = vpop.permute.xlu0 %1119 }
 0x46b   : > { %2426 = vmatpush3.msra.mxu1 %v1120_v8 }
 0x46c   : > { %2435 = vmatprep.subr.mxu1 %v2863_v1 }
 0x46e   : > { %v1344_v15 = vpop.permute.xlu0 %1343 }
 0x471   : > { %v2638_v9 = vpop.eup %2637 }
 0x472   : > { %v1117_v10 = vmul.f32 %v2638_v9, %v2634_v62  ;;  %v2524_v62 = vpack.c.bf16 %v1831_v61, %v1830_v60 }
 0x474   : > { %2428 = vmatmul.mubr.msk.f32.vlgmr.msra.gmra.mrb[6].mxu1 %vm866_vm2, %v1117_v10 }
 0x475   : > { %2436 = vmatpush3.msra.mxu1 %v862_v11  ;;  %2437 = vmatprep.mubr.msk.f32.mxu1 %vm2862_vm0, %v2863_v1  ;;  %v2323_v11 = vld [vmem:[%s3466_s11] ss:$0 sm:$0xff] }
 0x476   : > { %2445 = vmatprep.subr.mxu1 %v2863_v1 }
 0x4d4   : > { %v1024_v12 = vpop.f32.mrb[4].mxu1 }
 0x4d5   : > { %v2419_v13 = vpop.f32.mrb[5].mxu1  ;;  %2438 = vmatmul.mubr.msk.f32.vlgmr.msra.gmra.mrb[8].mxu1 %vm866_vm2, %v1024_v12 }
 0x4d6   : > { %2447 = vmatprep.mubr.msk.f32.mxu1 %vm2862_vm0, %v2863_v1 }
 0x547   : > { %v1191_v14 = vpop.f32.mrb[6].mxu1 }
 0x548   : > { %v2429_v16 = vpop.f32.mrb[7].mxu1  ;;  %2433 = vmatmul.mubr.msk.f32.vlgmr.msra.gmra.mrb[4].mxu0 %vm866_vm2, %v1191_v14 }
 0x549   : > { %2441 = vmatpush3.xpose.msk.msra.mxu0 %vm866_vm2, %v1344_v15  ;;  %2442 = vmatprep.mubr.msk.f32.mxu0 %vm2862_vm0, %v2863_v1 }
 0x54a   : > { %2450 = vmatprep.subr.mxu0 %v2863_v1 }
 0x54c   : > { %2443 = vmatmul.mubr.msk.f32.vlgmr.msra.gmra.mrb[6].mxu0 %vm866_vm2, %v1342_v17 }
 0x54d   : > { %2452 = vmatprep.mubr.msk.f32.mxu0 %vm2862_vm0, %v2863_v1 }
 0x5a8   : > { %v1337_v19 = vpop.f32.mrb[8].mxu1 }
 0x5a9   : > { %v2439_v20 = vpop.f32.mrb[9].mxu1 }
 0x61b   : > { %v1264_v21 = vpop.f32.mrb[4].mxu0 }
 0x61c   : > { %v1338_v22 = vadd.f32 %v1337_v19, %v1264_v21  ;;  %v2434_v23 = vpop.f32.mrb[5].mxu0 }
 0x61f   : > { %v1415_v24 = vpop.f32.mrb[6].mxu0 }
 0x620   : > { %v1419_v25 = vmul.f32 0.35355338, %v1415_v24  ;;  %v2444_v26 = vpop.f32.mrb[7].mxu0 }
 0x621   : > { %v1957_v26 = vld [vmem:[#allocation8] sm:$0xff] }
 0x622   : > { %v1420_v27 = vsel %vm866_vm2, %v1419_v25, -inf }
 0x623   : > { %1421 = vmax.xlane.f32.xlu0 %v1420_v27  ;;  %v1958_v27 = vld [vmem:[#allocation8 + $0x8] sm:$0xff] }
 0x639   : > { %1431 = vrot.lane.b32.xlu0 %v3270_v55, %s2865_s25  ;;  %s656_s25 = scalar_lea.vmem [#allocation10], %s3166_s29  ;;  %s2867_s29 = smov [#allocation10]  }
 0x63a   : > { %s2173_s2 = sshll.u32 %s656_s25, 4  ;;  %s3412_s2 = int_to_ptr.vmem [resolvable:$true] %s2173_s2 }
 0x63b   : > { %s2775_s0 = scalar_lea.vmem %s3412_s2, 128 }
 0x63c   : > { %p2776_p2 = scmp.ne.s32.totalorder %s3412_s2, %s2775_s0 }
 0x63d   : > { %1581 = vrot.lane.b32.xlu0 %v3233_v33, %s2866_s18 }
 0x63e   : > { %p2777_p6 = pnand %p2776_p2, %p3531_p13 }
 0x640   : > { %p2778_p10 = pneg %p2777_p6 }
 0x6b0   : > { %v1422_v28 = vpop.xlane.xlu0 %1421 }
 0x6b1   : > { %v1423_v29 = vsub.f32 %v1419_v25, %v1422_v28  ;;  %v1959_v28 = vld [vmem:[#allocation8 + $0x10] sm:$0xff] }
 0x6b3   : > { %v1424_v30 = vmul.f32 1.442695, %v1423_v29  ;;  %v2530_v29 = vpack.c.bf16 %v1958_v27, %v1957_v26 }
 0x6b4   : > { %v1432_v31 = vpop.permute.xlu0 %1431 }
 0x6b5   : > { %2639 = vpow2.f32 %v1424_v30  ;;  %2446 = vmatpush3.msra.mxu1 %v1432_v31  ;;  %v1960_v30 = vld [vmem:[#allocation8 + $0x18] sm:$0xff] }
 0x6b6   : > { %2455 = vmatprep.subr.mxu1 %v2863_v1  ;;  %v2533_v31 = vpack.c.bf16 %v1960_v30, %v1959_v28 }
 0x6b8   : > { %v1582_v38 = vpop.permute.xlu0 %1581 }
 0x6bf   : > { %v2640_v32 = vpop.eup %2639 }
 0x6c0   : > { %v1426_v34 = vsel %vm866_vm2, %v2640_v32, 0.0 }
 0x6c1   : > { %1427 = vadd.xlane.f32.xlu1 %v1426_v34 }
 0x6d2   : > { %1583 = vrot.lane.b32.xlu1 %v3220_v18, %s2866_s18  ;;  %v864_v18 = vld [vmem:[%s3463_s8 + $0x10] sm:$0xff] }
 0x6d3   : > { %2451 = vmatpush3.msra.mxu0 %v864_v18 }
 0x6d4   : > { %2460 = vmatprep.subr.mxu0 %v2863_v1 }
 0x74e   : > { %v1428_v35 = vpop.xlane.xlu1 %1427 }
 0x74f   : > { %2641 = vrcp.f32 %v1428_v35 }
 0x752   : > { %v1584_v33 = vpop.permute.xlu1 %1583 }
 0x759   : > { %v2642_v36 = vpop.eup %2641 }
 0x75a   : > { %v1430_v37 = vmul.f32 %v2642_v36, %v2640_v32 }
 0x75c   : > { %2448 = vmatmul.mubr.msk.f32.vlgmr.msra.gmra.mrb[10].mxu1 %vm866_vm2, %v1430_v37 }
 0x75d   : > { %2456 = vmatpush3.xpose.msk.msra.mxu1 %vm866_vm2, %v1584_v33  ;;  %2457 = vmatprep.mubr.msk.f32.mxu1 %vm2862_vm0, %v2863_v1 }
 0x75e   : > { %2465 = vmatprep.subr.mxu1 %v2863_v1 }
 0x760   : > { %2458 = vmatmul.mubr.msk.f32.vlgmr.msra.gmra.mrb[12].mxu1 %vm866_vm2, %v1582_v38 }
 0x761   : > { %2467 = vmatprep.mubr.msk.f32.mxu1 %vm2862_vm0, %v2863_v1  ;;  %2466 = vmatpush3.msra.mxu1 %v865_v51  ;;  %v2072_v51 = vld [vmem:[%s3526_s1 + $0x20] sm:$0xff] }
 0x762   : > { %2529 = vmatprep.subr.bf16.mxu1 %v2861_v0 }
 0x82f   : > { %v1503_v39 = vpop.f32.mrb[10].mxu1 }
 0x830   : > { %v2449_v40 = vpop.f32.mrb[11].mxu1  ;;  %2453 = vmatmul.mubr.msk.f32.vlgmr.msra.gmra.mrb[8].mxu0 %vm866_vm2, %v1503_v39  ;;  %v2325_v39 = vld [vmem:[%s3524_s13] ss:$0 sm:$0xff] }
 0x831   : > { %2462 = vmatprep.mubr.msk.f32.mxu0 %vm2862_vm0, %v2863_v1 }
 0x833   : > { %v1655_v41 = vpop.f32.mrb[12].mxu1 }
 0x834   : > { %v1659_v42 = vmul.f32 0.35355338, %v1655_v41  ;;  %v2459_v43 = vpop.f32.mrb[13].mxu1 }
 0x836   : > { %v1660_v44 = vsel %vm866_vm2, %v1659_v42, -inf }
 0x837   : > { %1661 = vmax.xlane.f32.xlu0 %v1660_v44 }
 0x84d   : > { %1671 = vrot.lane.b32.xlu0 %v3270_v55, %s2866_s18  ;;  %s2779_s18 = sshll.u32 %s2867_s29, 4  ;;  %s2780_s18 = int_to_ptr.vmem [resolvable:$false] %s2779_s18 }
 0x84e   : > { %s2781_s20 = scalar_lea.vmem %s2780_s18, 256  ;;  %p2782_p4 = scmp.lt.s32.totalorder %s3412_s2, %s2780_s18 }
 0x84f   : > { %p2783_p5 = scmp.lt.s32.totalorder %s2781_s20, %s2775_s0 }
 0x851   : > { %p2784_p3 = por %p2783_p5, %p2782_p4 }
 0x853   : > { %p2785_p7 = pnand %p2784_p3, %p2778_p10 }
 0x8c4   : > { %v1662_v45 = vpop.xlane.xlu0 %1661 }
 0x8c5   : > { %v1663_v46 = vsub.f32 %v1659_v42, %v1662_v45  ;;  %v2326_v42 = vld [vmem:[%s3525_s15] ss:$0 sm:$0xff]  ;;  %s3410_s15 = scalar_lea.hbm %s3530_s21, %s2332_s26 }
 0x8c6   : > { %v2068_v45 = vld [vmem:[%s3526_s1] sm:$0xff] }
 0x8c7   : > { %v1664_v47 = vmul.f32 1.442695, %v1663_v46  ;;  %v2069_v46 = vld [vmem:[%s3526_s1 + $0x8] sm:$0xff] }
 0x8c8   : > { %v1672_v48 = vpop.permute.xlu0 %1671 }
 0x8c9   : > { %2643 = vpow2.f32 %v1664_v47  ;;  %2461 = vmatpush3.msra.mxu0 %v1672_v48  ;;  %v2536_v47 = vpack.c.bf16 %v2069_v46, %v2068_v45  ;;  %v2070_v48 = vld [vmem:[%s3526_s1 + $0x10] sm:$0xff] }
 0x8ca   : > { %2523 = vmatprep.subr.bf16.mxu0 %v2861_v0 }
 0x8d3   : > { %v2644_v49 = vpop.eup %2643 }
 0x8d4   : > { %v1666_v50 = vsel %vm866_vm2, %v2644_v49, 0.0 }
 0x8d5   : > { %1667 = vadd.xlane.f32.xlu1 %v1666_v50 }
 0x903   : > { %v1576_v52 = vpop.f32.mrb[8].mxu0 }
 0x904   : > { %v1580_v53 = vadd.f32 %v1576_v52, %v1338_v22  ;;  %v2454_v54 = vpop.f32.mrb[9].mxu0  ;;  %v2073_v52 = vld [vmem:[%s3526_s1 + $0x28] sm:$0xff] }
 0x905   : > { %v2074_v54 = vld [vmem:[%s3526_s1 + $0x30] sm:$0xff] }
 0x962   : > { %v1668_v55 = vpop.xlane.xlu1 %1667 }
 0x963   : > { %2645 = vrcp.f32 %v1668_v55  ;;  %v2075_v55 = vld [vmem:[%s3526_s1 + $0x38] sm:$0xff] }
 0x96d   : > { %v2646_v56 = vpop.eup %2645 }
 0x96e   : > { %v1670_v57 = vmul.f32 %v2646_v56, %v2644_v49  ;;  %v2071_v49 = vld [vmem:[%s3526_s1 + $0x18] sm:$0xff]  ;;  %v2545_v56 = vpack.c.bf16 %v2075_v55, %v2074_v54 }
 0x96f   : > { %v2539_v50 = vpack.c.bf16 %v2071_v49, %v2070_v48 }
 0x970   : > { %2463 = vmatmul.mubr.msk.f32.vlgmr.msra.gmra.mrb[10].mxu0 %vm866_vm2, %v1670_v57  ;;  %v2327_v57 = vld [vmem:[%s3527_s27] ss:$0 sm:$0xff] }
 0x971   : > { %2478 = vmatprep.mubr.msk.f32.mxu0 %vm2862_vm0, %v2863_v1  ;;  %2525 = vmatpush3.bf16.msra.mxu0 %v2524_v62 }
 0x972   : > { %2526 = vmatprep.subr.bf16.mxu0 %v2861_v0 }
 0x975   : > { %2528 = vmatpush3.bf16.msra.mxu0 %v2527_v4 }
 0x976   : > { %2535 = vmatprep.subr.bf16.mxu0 %v2861_v0 }
 0xa43   : > { %v1743_v58 = vpop.f32.mrb[10].mxu0 }
 0xa44   : > { %v2464_v59 = vpop.f32.mrb[11].mxu0  ;;  %2468 = vmatmul.mubr.msk.f32.vlgmr.msra.gmra.mrb[14].mxu1 %vm866_vm2, %v1743_v58 }
 0xa45   : > { %2489 = vmatprep.mubr.msk.f32.mxu1 %vm2862_vm0, %v2863_v1  ;;  %2531 = vmatpush3.bf16.msra.mxu1 %v2530_v29 }
 0xa46   : > { %2532 = vmatprep.subr.bf16.mxu1 %v2861_v0 }
 0xa49   : > { %2534 = vmatpush3.bf16.msra.mxu1 %v2533_v31 }
 0xb17   : > { %v1816_v5 = vpop.f32.mrb[14].mxu1 }
 0xb18   : > { %v1820_v7 = vadd.f32 %v1816_v5, %v1580_v53  ;;  %v2469_v8 = vpop.f32.mrb[15].mxu1  ;;  %v2542_v53 = vpack.c.bf16 %v2073_v52, %v2072_v51 }
 0xb1a   : > { %v1828_v9 = vadd.f32 %v2322_v6, %v1820_v7 }
 0xb1c   : > { %v1829_v10 = vadd.f32 %v1828_v9, %v3194_v2 }
 0xb1e   : > { %2479 = vmatmul.mubr.msk.f32.vlgmr.msra.gmra.mrb[12].mxu0 %vm661_vm1, %v1829_v10 }
 0xb1f   : > { %2508 = vmatprep.mubr.msk.f32.mxu0 %vm2862_vm0, %v2863_v1  ;;  %2537 = vmatpush3.bf16.msra.mxu0 %v2536_v47 }
 0xb20   : > { %2538 = vmatprep.subr.bf16.mxu0 %v2861_v0 }
 0xb23   : > { %2540 = vmatpush3.bf16.msra.mxu0 %v2539_v50 }
 0xb24   : > { %2541 = vmatprep.subr.bf16.mxu0 %v2861_v0 }
 0xb27   : > { %2543 = vmatpush3.bf16.msra.mxu0 %v2542_v53 }
 0xb28   : > { %2544 = vmatprep.subr.bf16.mxu0 %v2861_v0 }
 0xb2b   : > { %2546 = vmatpush3.bf16.msra.mxu0 %v2545_v56 }
 0xbf1   : > { %v1910_v12 = vpop.f32.mrb[12].mxu0 }
 0xbf2   : > { %v1911_v13 = vadd.f32 %v2323_v11, %v1910_v12  ;;  %v2480_v14 = vpop.f32.mrb[13].mxu0 }
 0xbf4   : > { %v1914_v15 = vsub.f32 0.0, %v1911_v13 }
 0xbf6   : > { %v1915_v16 = vmul.f32 1.442695, %v1914_v15 }
 0xbf8   : > { %2647 = vpow2.f32 %v1915_v16 }
 0xc02   : > { %v2648_v17 = vpop.eup %2647 }
 0xc03   : > { %v1917_v19 = vadd.f32 1.0, %v2648_v17 }
 0xc05   : > { %2649 = vrcp.f32 %v1917_v19 }
 0xc0f   : > { %v2650_v20 = vpop.eup %2649 }
 0xc10   : > { %v3357_v2 = vmul.f32 %v2650_v20, %v1829_v10 }
 0xc12   : > { %v1923_v21 = vsel %vm661_vm1, %v3357_v2, 0.0 }
 0xc13   : > { %1924 = vadd.xlane.f32.xlu1 %v1923_v21 }
 0xca0   : > { %v1925_v1 = vpop.xlane.xlu1 %1924 }
 0xca1   : > { %v1926_v22 = vmul.f32 0.03125, %v1925_v1 }
 0xca3   : > { %v1927_v23 = vsub.f32 %v3357_v2, %v1926_v22 }
 0xca5   : > { %v1928_v24 = vmul.f32 %v1927_v23, %v1927_v23  ;;  %v1946_v40 = vmul.f32 %v2325_v39, %v1927_v23 }
 0xca7   : > { %v1929_v25 = vsel %vm661_vm1, %v1928_v24, 0.0  ;;  %v2329_v24 = vld [vmem:[%s3529_s12] ss:$0 sm:$0xff] }
 0xca8   : > { %1930 = vadd.xlane.f32.xlu1 %v1929_v25 }
 0xd35   : > { %v1931_v32 = vpop.xlane.xlu1 %1930 }
 0xd36   : > { %v1932_v34 = vmul.f32 0.032258064, %v1931_v32 }
 0xd38   : > { %2651 = vrsqrt.f32 %v1932_v34  ;;  %vm1935_vm5 = vcmp.eq.f32.partialorder %v1932_v34, inf  ;;  %v1938_v37 = vand.u32 2147483648, %v1932_v34  ;;  %vm1937_vm6 = vcmp.eq.f32.partialorder %v1932_v34, 0.0 }
 0xd42   : > { %v2652_v35 = vpop.eup %2651 }
 0xd43   : > { %v1934_v36 = vmul.f32 %v2652_v35, %v1932_v34 }
 0xd45   : > { %v1936_v33 = vsel %vm1935_vm5, %v1932_v34, %v1934_v36 }
 0xd46   : > { %v1939_v38 = vsel %vm1937_vm6, %v1938_v37, %v1936_v33 }
 0xd47   : > { %v1947_v18 = vadd.f32 1e-06, %v1939_v38 }
 0xd49   : > { %2653 = vrcp.f32 %v1947_v18 }
 0xd53   : > { %v2654_v41 = vpop.eup %2653 }
 0xd54   : > { %v1949_v43 = vmul.f32 %v2654_v41, %v1946_v40 }
 0xd56   : > { %v1956_v44 = vadd.f32 %v2326_v42, %v1949_v43 }
 0xd58   : > { %2490 = vmatmul.mubr.msk.f32.vlgmr.msra.gmra.mrb[16].mxu1 %vm661_vm1, %v1956_v44 }
 0xe2b   : > { %v2037_v58 = vpop.f32.mrb[16].mxu1 }
 0xe2c   : > { %v2038_v59 = vadd.f32 %v2327_v57, %v2037_v58  ;;  %v2491_v60 = vpop.f32.mrb[17].mxu1 }
 0xe2e   : > { %v2041_v61 = vmul.f32 0.70710677, %v2038_v59  ;;  %v2065_v1 = vmul.f32 0.5, %v2038_v59 }
 0xe30   : > { %v2042_v62 = vand.u32 2147483647, %v2041_v61  ;;  %vm2062_vm7 = vcmp.ge.f32.partialorder %v2041_v61, 0.0 }
 0xe32   : > { %v2043_v0 = vmul.f32 0.3275911, %v2042_v62  ;;  %v2056_v3 = vsub.f32 0.0, %v2042_v62 }
 0xe34   : > { %v2044_v63 = vadd.f32 1.0, %v2043_v0  ;;  %v2057_v5 = vmul.f32 %v2056_v3, %v2042_v62 }
 0xe36   : > { %2655 = vrcp.f32 %v2044_v63  ;;  %v2058_v8 = vmul.f32 1.442695, %v2057_v5 }
 0xe38   : > { %2657 = vpow2.f32 %v2058_v8 }
 0xe40   : > { %v2656_v4 = vpop.eup %2655 }
 0xe41   : > { %v2047_v6 = vmul.f32 1.0614054, %v2656_v4 }
 0xe42   : > { %v2658_v16 = vpop.eup %2657 }
 0xe43   : > { %v2048_v7 = vadd.f32 -1.4531521, %v2047_v6 }
 0xe45   : > { %v2049_v9 = vmul.f32 %v2656_v4, %v2048_v7 }
 0xe47   : > { %v2050_v10 = vadd.f32 1.4214138, %v2049_v9 }
 0xe49   : > { %v2051_v11 = vmul.f32 %v2656_v4, %v2050_v10 }
 0xe4b   : > { %v2052_v12 = vadd.f32 -0.28449672, %v2051_v11 }
 0xe4d   : > { %v2053_v13 = vmul.f32 %v2656_v4, %v2052_v12 }
 0xe4f   : > { %v2054_v14 = vadd.f32 0.2548296, %v2053_v13 }
 0xe51   : > { %v2055_v15 = vmul.f32 %v2656_v4, %v2054_v14 }
 0xe53   : > { %v2060_v17 = vmul.f32 %v2658_v16, %v2055_v15 }
 0xe55   : > { %v2061_v19 = vsub.f32 1.0, %v2060_v17 }
 0xe57   : > { %v2063_v20 = vsub.f32 0.0, %v2061_v19 }
 0xe59   : > { %v2064_v21 = vsel %vm2062_vm7, %v2061_v19, %v2063_v20 }
 0xe5a   : > { %v2066_v22 = vadd.f32 1.0, %v2064_v21 }
 0xe5c   : > { %v2067_v23 = vmul.f32 %v2066_v22, %v2065_v1 }
 0xe5e   : > { %2509 = vmatmul.mubr.msk.f32.vlgmr.msra.gmra.mrb[14].mxu0 %vm2083_vm8, %v2067_v23 }
 0xf31   : > { %v2153_v25 = vpop.f32.mrb[14].mxu0 }
 0xf32   : > { %v2154_v26 = vadd.f32 %v2329_v24, %v2153_v25  ;;  %v2510_v27 = vpop.f32.mrb[15].mxu0 }
 0xf34   : > { %v2157_v28 = vadd.f32 %v2154_v26, %v3357_v2 }
 0xf36   : > { %2158 = vst.msk [vmem:[%s656_s25] sm:$0xff] %vm661_vm1, %v2157_v28 }
 0xf37   : > { %2788 = shalt.err (!%p2785_p7)
}
 0xf38   : > { %s2789_s22 = scalar_lea.hbm %s3410_s15, 128  ;;  %s2793_s17 = scalar_lea.hbm %s3530_s21, 256 }
 0xf39   : > { %p2790_p1 = scmp.ne.s32.totalorder %s3410_s15, %s2789_s22  ;;  %p2794_p0 = scmp.lt.u32.totalorder %s3410_s15, %s3530_s21 }
 0xf3a   : > { %p2795_p9 = scmp.lt.u32.totalorder %s2793_s17, %s2789_s22  ;;  %p2797_p2 = scmp.lt.u32.totalorder %s2789_s22, %s3410_s15 }
 0xf3b   : > { %p2791_p8 = pnand %p2790_p1, %p3531_p13 }
 0xf3c   : > { %p2796_p12 = por %p2795_p9, %p2794_p0 }
 0xf3d   : > { %p2792_p11 = pneg %p2791_p8 }
 0xf3e   : > { %p2798_p6 = por %p2797_p2, %p2796_p12 }
 0xf40   : > { %p2799_p10 = pnand %p2798_p6, %p2792_p11 }
 0xf42   : > { %2802 = shalt.err (!%p2799_p10)
}
 0xf43   : > { %2559 = dma.vmem_to_hbm [thread:$0]  (%p3531_p13), %s3412_s2, 128, %s3410_s15, %s2160_s23  }
 0xf44 PF: > { %s3532_s25 = sld [smem:[#allocation16_spill]]  ;;  %s3533_s13 = sld [smem:[#allocation18_spill]] }
 0xf45   : > { %p3535_p5 = scmp.ge.s32.totalorder %s2853_s30, 2 }
 0xf4a   : > { %s2185_s10 = sand.u32 1, %s3532_s25   ;;  %p3534_p4 = scmp.ne.s32.totalorder %s3533_s13, 0 }
 0xf4b   : > { %s2186_s0 = scalar_lea.sflag [#allocation4], %s2185_s10 }
 0xf4c   : > { %p2576_p3 = pnand %p3535_p5, %p3534_p4 }
 0xf4e   : > { %2836 = dma.done.wait (!%p2576_p3), %s2186_s0, 128  }
 0xf4f   : > { %2838 = vsyncadd (!%p2576_p3), %s2186_s0, 4294967168  ;;  %s3536_s30 = sld [smem:[#allocation19_spill]]  ;;  %s3537_s29 = sld [smem:[#allocation17_spill]] }
 0xf50   : > { %s3538_s18 = sld [smem:[#allocation21_spill]]  ;;  %s3539_s27 = smov %s2845_s28 }
 0xf55   : > { %p35_p7 = scmp.ge.s32.totalorder %s3536_s30, 4   ;;  %s3540_s28 = smov %s3537_s29 }
 0xf56   : > { %s3541_s29 = smov %s3538_s18 }
 0xf57   :  { %37 = sbr.rel (!%p35_p7) target bundleno = 20 (0x14), region = 158 }
 0xf5e   :  { %2191 = vsyncpa [#allocation3], 1 }
 0xf5f   :  { %2193 = vsyncpa [#allocation3 + $0x1], 1 }
 0xf60   :  { %2194 = vsyncpa [#allocation6], 1 }
 0xf61   :  { %2196 = vsyncpa [#allocation6 + $0x1], 1 }
 0xf62   :  { %2197 = vsyncpa [#allocation9], 1 }
 0xf63   :  { %2198 = vsyncpa [#allocation4], 1 }
 0xf64   :  { %2200 = vsyncpa [#allocation4 + $0x1], 1 }

</bundles_post_ra>
